<compile_context>
chip_gen: v6e
topology: v6e:2x2x1
jax: 0.10.0
libtpu: 0.0.40
codegen_flags: <defaults>
</compile_context>

<pallas_src>
import functools

import jax
import jax.numpy as jnp
from jax.experimental import pallas as pl
from jax.experimental.pallas import tpu as pltpu


# ------------------------------ fused Pallas kernel ------------------------------ #

def _decoder_block_kernel(
    x_ref, v_ref, trg_mask_ref, src_mask_ref,
    attn_woT_ref, attn_bo_ref, norm_g_ref, norm_b_ref,
    tb_woT_ref, tb_bo_ref, n1_g_ref, n1_b_ref,
    ff_w1T_ref, ff_b1_ref, ff_w2T_ref, ff_b2_ref,
    n2_g_ref, n2_b_ref,
    o_ref, *, heads, head_dim, embed,
):
    """Whole DecoderBlock for one batch element (grid axis 0 == batch, 'parallel').

    x_ref/v_ref:       (1, S, E) f32
    *_mask_ref:        (1, 1, S, S) f32 (0 == masked)
    *_woT/_w1T/_w2T:   pre-transposed (in, out) bf16 weights
    biases / LN params: (1, E) or (1, FE) f32
    o_ref:             (1, S, E) f32
    """
    S = x_ref.shape[1]
    D = head_dim
    scale = jnp.float32(1.0 / (float(embed) ** 0.5))

    def attention(v_f32, mask, woT_ref, bo_ref):
        """Buggy SelfAttention: Q = K = V = `values`; only fc_out is applied."""
        v_bf = v_f32.astype(jnp.bfloat16)                       # (S, E) matmul operand
        woT = woT_ref[...]                                      # (E, E) bf16, (in, out)
        acc = jnp.zeros((S, embed), jnp.float32)
        for h in range(heads):                                  # small & static -> unrolled
            vh = v_bf[:, h * D:(h + 1) * D]                     # (S, D)
            # energy = vh @ vh^T via contraction on the last dims (no explicit transpose)
            e = jax.lax.dot_general(vh, vh, (((1,), (1,)), ((), ())),
                                    preferred_element_type=jnp.float32)   # (S, S) f32
            e = jnp.where(mask == 0, jnp.float32(-1e20), e)     # mask BEFORE scale (ref bug)
            e = e * scale
            e = e - jnp.max(e, axis=-1, keepdims=True)
            p = jnp.exp(e)
            p = p * pl.reciprocal(jnp.sum(p, axis=-1, keepdims=True), approx=True)
            ph = jnp.dot(p.astype(jnp.bfloat16), vh,
                         preferred_element_type=jnp.float32)     # (S, D) f32
            # Fold fc_out in per head (rows h*D:(h+1)*D of Wo^T): no concatenate needed.
            acc = acc + jnp.dot(ph.astype(jnp.bfloat16), woT[h * D:(h + 1) * D, :],
                                preferred_element_type=jnp.float32)
        return acc + bo_ref[0]

    def layernorm(xx, g, b):
        mu = jnp.mean(xx, axis=-1, keepdims=True)
        d = xx - mu
        var = jnp.mean(d * d, axis=-1, keepdims=True)
        return d * jax.lax.rsqrt(var + 1e-5) * g + b

    x = x_ref[0].astype(jnp.float32)        # (S, E)
    v = v_ref[0].astype(jnp.float32)        # (S, E)

    # DecoderBlock: self-attention on x with trg_mask; dropout == identity.
    att = attention(x, trg_mask_ref[0, 0], attn_woT_ref, attn_bo_ref)
    query = layernorm(att + x, norm_g_ref[0], norm_b_ref[0])

    # TransformerBlock "cross" attention: depends only on `value` (reference bug).
    att2 = attention(v, src_mask_ref[0, 0], tb_woT_ref, tb_bo_ref)
    xb = layernorm(att2 + query, n1_g_ref[0], n1_b_ref[0])

    # Feed-forward: Linear -> ReLU -> Linear (pre-transposed bf16 weights, f32 acc).
    h = jnp.dot(xb.astype(jnp.bfloat16), ff_w1T_ref[...],
                preferred_element_type=jnp.float32) + ff_b1_ref[0]
    h = jnp.maximum(h, 0.0)
    ff = jnp.dot(h.astype(jnp.bfloat16), ff_w2T_ref[...],
                 preferred_element_type=jnp.float32) + ff_b2_ref[0]

    out = layernorm(ff + xb, n2_g_ref[0], n2_b_ref[0])
    o_ref[0] = out.astype(o_ref.dtype)


# --------------------------------- wrapper --------------------------------------- #

def decoder_block_forward(x, value, key_in, src_mask, trg_mask, params, heads):
    """Fused DecoderBlock forward.  `key_in` is unused by the math (reference bug)."""
    del key_in
    N, S, E = x.shape
    FE = params["ff_w1"].shape[0]
    D = E // heads

    # Pre-transpose matmul weights to (in, out) and pre-cast to bf16 on the host.
    attn_woT = params["attn_wo"].T.astype(jnp.bfloat16)      # (E, E)
    tb_woT = params["tb_attn_wo"].T.astype(jnp.bfloat16)     # (E, E)
    ff_w1T = params["ff_w1"].T.astype(jnp.bfloat16)          # (E, FE)
    ff_w2T = params["ff_w2"].T.astype(jnp.bfloat16)          # (FE, E)

    row = lambda p: p.reshape(1, -1)                          # 1-D params -> (1, dim)
    const2 = lambda b: (0, 0)                                 # weight blocks: constant index

    kernel = functools.partial(_decoder_block_kernel,
                               heads=heads, head_dim=D, embed=E)

    return pl.pallas_call(
        kernel,
        out_shape=jax.ShapeDtypeStruct((N, S, E), x.dtype),
        grid=(N,),
        in_specs=[
            pl.BlockSpec((1, S, E), lambda b: (b, 0, 0)),         # x
            pl.BlockSpec((1, S, E), lambda b: (b, 0, 0)),         # value
            pl.BlockSpec((1, 1, S, S), lambda b: (b, 0, 0, 0)),   # trg_mask
            pl.BlockSpec((1, 1, S, S), lambda b: (b, 0, 0, 0)),   # src_mask
            pl.BlockSpec((E, E), const2),                         # attn fc_out W^T (bf16)
            pl.BlockSpec((1, E), const2),                         # attn fc_out bias
            pl.BlockSpec((1, E), const2),                         # norm gamma
            pl.BlockSpec((1, E), const2),                         # norm beta
            pl.BlockSpec((E, E), const2),                         # tb attn fc_out W^T (bf16)
            pl.BlockSpec((1, E), const2),                         # tb attn fc_out bias
            pl.BlockSpec((1, E), const2),                         # tb norm1 gamma
            pl.BlockSpec((1, E), const2),                         # tb norm1 beta
            pl.BlockSpec((E, FE), const2),                        # ff W1^T (bf16)
            pl.BlockSpec((1, FE), const2),                        # ff b1
            pl.BlockSpec((FE, E), const2),                        # ff W2^T (bf16)
            pl.BlockSpec((1, E), const2),                         # ff b2
            pl.BlockSpec((1, E), const2),                         # tb norm2 gamma
            pl.BlockSpec((1, E), const2),                         # tb norm2 beta
        ],
        out_specs=pl.BlockSpec((1, S, E), lambda b: (b, 0, 0)),
        compiler_params=pltpu.CompilerParams(
            dimension_semantics=("parallel",),
            vmem_limit_bytes=32 * 1024 * 1024,
        ),
    )(x, value, trg_mask, src_mask,
      attn_woT, row(params["attn_bo"]),
      row(params["norm_g"]), row(params["norm_b"]),
      tb_woT, row(params["tb_attn_bo"]),
      row(params["tb_norm1_g"]), row(params["tb_norm1_b"]),
      ff_w1T, row(params["ff_b1"]),
      ff_w2T, row(params["ff_b2"]),
      row(params["tb_norm2_g"]), row(params["tb_norm2_b"]))


# ----------------------------- pure-JAX f32 reference ----------------------------- #

def _ref_attention(values, mask, wo, bo, embed, heads):
    N, S, E = values.shape
    D = E // heads
    v4 = values.reshape(N, S, heads, D)
    q4, k4 = v4, v4                                   # reference-code bug reproduced
    energy = jnp.einsum("nqhd,nkhd->nhqk", q4, k4)
    energy = jnp.where(mask == 0, jnp.float32(-1e20), energy)
    attn = jax.nn.softmax(energy / (embed ** 0.5), axis=3)
    out = jnp.einsum("nhql,nlhd->nqhd", attn, v4).reshape(N, S, heads * D)
    return out @ wo.T + bo


def _ref_layernorm(x, g, b):
    mu = jnp.mean(x, axis=-1, keepdims=True)
    var = jnp.mean((x - mu) ** 2, axis=-1, keepdims=True)
    return (x - mu) / jnp.sqrt(var + 1e-5) * g + b


def _ref_decoder_block(x, value, key_in, src_mask, trg_mask, p, E, heads):
    att = _ref_attention(x, trg_mask, p["attn_wo"], p["attn_bo"], E, heads)
    query = _ref_layernorm(att + x, p["norm_g"], p["norm_b"])
    att2 = _ref_attention(value, src_mask, p["tb_attn_wo"], p["tb_attn_bo"], E, heads)
    xb = _ref_layernorm(att2 + query, p["tb_norm1_g"], p["tb_norm1_b"])
    h = jnp.maximum(xb @ p["ff_w1"].T + p["ff_b1"], 0.0)
    ff = h @ p["ff_w2"].T + p["ff_b2"]
    return _ref_layernorm(ff + xb, p["tb_norm2_g"], p["tb_norm2_b"])


# -------------------------------------- main -------------------------------------- #

if __name__ == "__main__":
    N, S, E, H, F = 2, 8, 32, 4, 2          # batch, seq, embed_size, heads, forward_expansion
    FE = F * E

    root = jax.random.PRNGKey(0)
    k = jax.random.split(root, 12)

    params = {
        # DecoderBlock.attention.fc_out
        "attn_wo": 0.1 * jax.random.normal(k[0], (E, E), jnp.float32),
        "attn_bo": 0.1 * jax.random.normal(k[1], (E,), jnp.float32),
        # DecoderBlock.norm (PyTorch default init)
        "norm_g": jnp.ones((E,), jnp.float32),
        "norm_b": jnp.zeros((E,), jnp.float32),
        # TransformerBlock.attention.fc_out
        "tb_attn_wo": 0.1 * jax.random.normal(k[2], (E, E), jnp.float32),
        "tb_attn_bo": 0.1 * jax.random.normal(k[3], (E,), jnp.float32),
        # TransformerBlock.norm1 / norm2
        "tb_norm1_g": jnp.ones((E,), jnp.float32),
        "tb_norm1_b": jnp.zeros((E,), jnp.float32),
        "tb_norm2_g": jnp.ones((E,), jnp.float32),
        "tb_norm2_b": jnp.zeros((E,), jnp.float32),
        # TransformerBlock.feed_forward
        "ff_w1": 0.1 * jax.random.normal(k[4], (FE, E), jnp.float32),
        "ff_b1": 0.1 * jax.random.normal(k[5], (FE,), jnp.float32),
        "ff_w2": 0.1 * jax.random.normal(k[6], (E, FE), jnp.float32),
        "ff_b2": 0.1 * jax.random.normal(k[7], (E,), jnp.float32),
    }
    # NOTE: the per-head values/keys/queries Linear layers exist in __init__ but are
    # never used in forward() of the reference code, so they are omitted here.

    x = jax.random.normal(k[8], (N, S, E), jnp.float32)
    value = jax.random.normal(k[9], (N, S, E), jnp.float32)
    key_in = jax.random.normal(k[10], (N, S, E), jnp.float32)   # unused by the math (ref bug)

    trg_mask = jnp.tril(jnp.ones((S, S), jnp.float32))[None, None].repeat(N, axis=0)  # (N,1,S,S)
    src_mask = jnp.ones((N, 1, S, S), jnp.float32)

    out = decoder_block_forward(x, value, key_in, src_mask, trg_mask, params, H)
    out = jax.block_until_ready(out)

    ref = _ref_decoder_block(x, value, key_in, src_mask, trg_mask, params, E, H)
    assert out.shape == (N, S, E)
    # bf16 MXU operands (per perf review) introduce ~1e-3..1e-2 deviation vs the pure
    # f32 reference across the three cascaded stages; 2e-2 keeps ample margin.
    assert jnp.allclose(out, ref, atol=2e-2, rtol=2e-2), "mismatch vs pure-JAX reference"

    print("KERNEL_OK")
</pallas_src>

<mosaic_0001>
module attributes {stable_mosaic.version = 11 : i64} {
  func.func @_decoder_block_kernel(%arg0: i32, %arg1: memref<1x8x32xf32, #tpu.memory_space<vmem>>, %arg2: memref<1x8x32xf32, #tpu.memory_space<vmem>>, %arg3: memref<1x1x8x8xf32, #tpu.memory_space<vmem>>, %arg4: memref<1x1x8x8xf32, #tpu.memory_space<vmem>>, %arg5: memref<32x32xbf16, #tpu.memory_space<vmem>>, %arg6: memref<1x32xf32, #tpu.memory_space<vmem>>, %arg7: memref<1x32xf32, #tpu.memory_space<vmem>>, %arg8: memref<1x32xf32, #tpu.memory_space<vmem>>, %arg9: memref<32x32xbf16, #tpu.memory_space<vmem>>, %arg10: memref<1x32xf32, #tpu.memory_space<vmem>>, %arg11: memref<1x32xf32, #tpu.memory_space<vmem>>, %arg12: memref<1x32xf32, #tpu.memory_space<vmem>>, %arg13: memref<32x64xbf16, #tpu.memory_space<vmem>>, %arg14: memref<1x64xf32, #tpu.memory_space<vmem>>, %arg15: memref<64x32xbf16, #tpu.memory_space<vmem>>, %arg16: memref<1x32xf32, #tpu.memory_space<vmem>>, %arg17: memref<1x32xf32, #tpu.memory_space<vmem>>, %arg18: memref<1x32xf32, #tpu.memory_space<vmem>>, %arg19: memref<1x8x32xf32, #tpu.memory_space<vmem>>) attributes {dimension_semantics = [#tpu.dimension_semantics<parallel>], iteration_bounds = array<i64: 2>, scalar_prefetch = 0 : i64, scratch_operands = 0 : i64, tpu.core_type = #tpu.core_type<tc>, window_params = [{transform_indices = @transform_0, window_bounds = array<i64: 1, 8, 32>}, {transform_indices = @transform_1, window_bounds = array<i64: 1, 8, 32>}, {transform_indices = @transform_2, window_bounds = array<i64: 1, 1, 8, 8>}, {transform_indices = @transform_3, window_bounds = array<i64: 1, 1, 8, 8>}, {pipeline_mode = #tpu.pipeline_mode<synchronous>, transform_indices = @transform_4, window_bounds = array<i64: 32, 32>}, {pipeline_mode = #tpu.pipeline_mode<synchronous>, transform_indices = @transform_5, window_bounds = array<i64: 1, 32>}, {pipeline_mode = #tpu.pipeline_mode<synchronous>, transform_indices = @transform_6, window_bounds = array<i64: 1, 32>}, {pipeline_mode = #tpu.pipeline_mode<synchronous>, transform_indices = @transform_7, window_bounds = array<i64: 1, 32>}, {pipeline_mode = #tpu.pipeline_mode<synchronous>, transform_indices = @transform_8, window_bounds = array<i64: 32, 32>}, {pipeline_mode = #tpu.pipeline_mode<synchronous>, transform_indices = @transform_9, window_bounds = array<i64: 1, 32>}, {pipeline_mode = #tpu.pipeline_mode<synchronous>, transform_indices = @transform_10, window_bounds = array<i64: 1, 32>}, {pipeline_mode = #tpu.pipeline_mode<synchronous>, transform_indices = @transform_11, window_bounds = array<i64: 1, 32>}, {pipeline_mode = #tpu.pipeline_mode<synchronous>, transform_indices = @transform_12, window_bounds = array<i64: 32, 64>}, {pipeline_mode = #tpu.pipeline_mode<synchronous>, transform_indices = @transform_13, window_bounds = array<i64: 1, 64>}, {pipeline_mode = #tpu.pipeline_mode<synchronous>, transform_indices = @transform_14, window_bounds = array<i64: 64, 32>}, {pipeline_mode = #tpu.pipeline_mode<synchronous>, transform_indices = @transform_15, window_bounds = array<i64: 1, 32>}, {pipeline_mode = #tpu.pipeline_mode<synchronous>, transform_indices = @transform_16, window_bounds = array<i64: 1, 32>}, {pipeline_mode = #tpu.pipeline_mode<synchronous>, transform_indices = @transform_17, window_bounds = array<i64: 1, 32>}, {transform_indices = @transform_18, window_bounds = array<i64: 1, 8, 32>}]} {
    %c0 = arith.constant 0 : index
    %c0_0 = arith.constant 0 : index
    %c0_1 = arith.constant 0 : index
    %0 = vector.load %arg1[%c0, %c0_0, %c0_1] : memref<1x8x32xf32, #tpu.memory_space<vmem>>, vector<1x8x32xf32>
    %1 = vector.shape_cast %0 : vector<1x8x32xf32> to vector<8x32xf32>
    %c0_2 = arith.constant 0 : index
    %c0_3 = arith.constant 0 : index
    %c0_4 = arith.constant 0 : index
    %2 = vector.load %arg2[%c0_2, %c0_3, %c0_4] : memref<1x8x32xf32, #tpu.memory_space<vmem>>, vector<1x8x32xf32>
    %3 = vector.shape_cast %2 : vector<1x8x32xf32> to vector<8x32xf32>
    %c0_5 = arith.constant 0 : index
    %c0_6 = arith.constant 0 : index
    %c0_7 = arith.constant 0 : index
    %c0_8 = arith.constant 0 : index
    %4 = vector.load %arg3[%c0_5, %c0_6, %c0_7, %c0_8] : memref<1x1x8x8xf32, #tpu.memory_space<vmem>>, vector<1x1x8x8xf32>
    %5 = vector.shape_cast %4 : vector<1x1x8x8xf32> to vector<8x8xf32>
    %6 = arith.truncf %1 : vector<8x32xf32> to vector<8x32xbf16>
    %c0_9 = arith.constant 0 : index
    %c0_10 = arith.constant 0 : index
    %7 = vector.load %arg5[%c0_9, %c0_10] : memref<32x32xbf16, #tpu.memory_space<vmem>>, vector<32x32xbf16>
    %cst = arith.constant 0.000000e+00 : f32
    %8 = vector.broadcast %cst : f32 to vector<8x32xf32>
    %9 = vector.extract_strided_slice %6 {offsets = [0, 0], sizes = [8, 8], strides = [1, 1]} : vector<8x32xbf16> to vector<8x8xbf16>
    %cst_11 = arith.constant dense<0.000000e+00> : vector<8x8xf32>
    %10 = tpu.matmul %9, %9, %cst_11 {dimension_numbers = #tpu.dot_dimension_numbers<[1], [1], [0], [0], [0, 0, 1, 0], [], []>} : vector<8x8xbf16>, vector<8x8xbf16>, vector<8x8xf32> -> vector<8x8xf32>
    %cst_12 = arith.constant 0.000000e+00 : f32
    %11 = vector.broadcast %cst_12 : f32 to vector<8x8xf32>
    %12 = arith.cmpf oeq, %5, %11 : vector<8x8xf32>
    %cst_13 = arith.constant -1.000000e+20 : f32
    %13 = vector.broadcast %cst_13 : f32 to vector<8x8xf32>
    %14 = arith.select %12, %13, %10 : vector<8x8xi1>, vector<8x8xf32>
    %cst_14 = arith.constant 0.176776692 : f32
    %15 = vector.broadcast %cst_14 : f32 to vector<8x8xf32>
    %16 = arith.mulf %14, %15 : vector<8x8xf32>
    %cst_15 = arith.constant dense<0xFF800000> : vector<8xf32>
    %17 = vector.multi_reduction <maximumf>, %16, %cst_15 [1] : vector<8x8xf32> to vector<8xf32>
    %18 = vector.shape_cast %17 : vector<8xf32> to vector<8x1xf32>
    %19 = vector.broadcast %18 : vector<8x1xf32> to vector<8x8xf32>
    %20 = arith.subf %16, %19 : vector<8x8xf32>
    %21 = math.exp %20 : vector<8x8xf32>
    %cst_16 = arith.constant dense<0.000000e+00> : vector<8xf32>
    %22 = vector.multi_reduction <add>, %21, %cst_16 [1] : vector<8x8xf32> to vector<8xf32>
    %23 = vector.shape_cast %22 : vector<8xf32> to vector<8x1xf32>
    %24 = tpu.reciprocal %23 {approx = true} : vector<8x1xf32> -> vector<8x1xf32>
    %25 = vector.broadcast %24 : vector<8x1xf32> to vector<8x8xf32>
    %26 = arith.mulf %21, %25 : vector<8x8xf32>
    %27 = arith.truncf %26 : vector<8x8xf32> to vector<8x8xbf16>
    %cst_17 = arith.constant dense<0.000000e+00> : vector<8x8xf32>
    %28 = tpu.matmul %27, %9, %cst_17 {dimension_numbers = #tpu.dot_dimension_numbers<[1], [0], [0], [1], [0, 0, 1, 1], [], []>} : vector<8x8xbf16>, vector<8x8xbf16>, vector<8x8xf32> -> vector<8x8xf32>
    %29 = arith.truncf %28 : vector<8x8xf32> to vector<8x8xbf16>
    %30 = vector.extract_strided_slice %7 {offsets = [0, 0], sizes = [8, 32], strides = [1, 1]} : vector<32x32xbf16> to vector<8x32xbf16>
    %cst_18 = arith.constant dense<0.000000e+00> : vector<8x32xf32>
    %31 = tpu.matmul %29, %30, %cst_18 {dimension_numbers = #tpu.dot_dimension_numbers<[1], [0], [0], [1], [0, 0, 1, 1], [], []>} : vector<8x8xbf16>, vector<8x32xbf16>, vector<8x32xf32> -> vector<8x32xf32>
    %32 = arith.addf %8, %31 : vector<8x32xf32>
    %33 = vector.extract_strided_slice %6 {offsets = [0, 8], sizes = [8, 8], strides = [1, 1]} : vector<8x32xbf16> to vector<8x8xbf16>
    %cst_19 = arith.constant dense<0.000000e+00> : vector<8x8xf32>
    %34 = tpu.matmul %33, %33, %cst_19 {dimension_numbers = #tpu.dot_dimension_numbers<[1], [1], [0], [0], [0, 0, 1, 0], [], []>} : vector<8x8xbf16>, vector<8x8xbf16>, vector<8x8xf32> -> vector<8x8xf32>
    %cst_20 = arith.constant 0.000000e+00 : f32
    %35 = vector.broadcast %cst_20 : f32 to vector<8x8xf32>
    %36 = arith.cmpf oeq, %5, %35 : vector<8x8xf32>
    %cst_21 = arith.constant -1.000000e+20 : f32
    %37 = vector.broadcast %cst_21 : f32 to vector<8x8xf32>
    %38 = arith.select %36, %37, %34 : vector<8x8xi1>, vector<8x8xf32>
    %cst_22 = arith.constant 0.176776692 : f32
    %39 = vector.broadcast %cst_22 : f32 to vector<8x8xf32>
    %40 = arith.mulf %38, %39 : vector<8x8xf32>
    %cst_23 = arith.constant dense<0xFF800000> : vector<8xf32>
    %41 = vector.multi_reduction <maximumf>, %40, %cst_23 [1] : vector<8x8xf32> to vector<8xf32>
    %42 = vector.shape_cast %41 : vector<8xf32> to vector<8x1xf32>
    %43 = vector.broadcast %42 : vector<8x1xf32> to vector<8x8xf32>
    %44 = arith.subf %40, %43 : vector<8x8xf32>
    %45 = math.exp %44 : vector<8x8xf32>
    %cst_24 = arith.constant dense<0.000000e+00> : vector<8xf32>
    %46 = vector.multi_reduction <add>, %45, %cst_24 [1] : vector<8x8xf32> to vector<8xf32>
    %47 = vector.shape_cast %46 : vector<8xf32> to vector<8x1xf32>
    %48 = tpu.reciprocal %47 {approx = true} : vector<8x1xf32> -> vector<8x1xf32>
    %49 = vector.broadcast %48 : vector<8x1xf32> to vector<8x8xf32>
    %50 = arith.mulf %45, %49 : vector<8x8xf32>
    %51 = arith.truncf %50 : vector<8x8xf32> to vector<8x8xbf16>
    %cst_25 = arith.constant dense<0.000000e+00> : vector<8x8xf32>
    %52 = tpu.matmul %51, %33, %cst_25 {dimension_numbers = #tpu.dot_dimension_numbers<[1], [0], [0], [1], [0, 0, 1, 1], [], []>} : vector<8x8xbf16>, vector<8x8xbf16>, vector<8x8xf32> -> vector<8x8xf32>
    %53 = arith.truncf %52 : vector<8x8xf32> to vector<8x8xbf16>
    %54 = vector.extract_strided_slice %7 {offsets = [8, 0], sizes = [8, 32], strides = [1, 1]} : vector<32x32xbf16> to vector<8x32xbf16>
    %cst_26 = arith.constant dense<0.000000e+00> : vector<8x32xf32>
    %55 = tpu.matmul %53, %54, %cst_26 {dimension_numbers = #tpu.dot_dimension_numbers<[1], [0], [0], [1], [0, 0, 1, 1], [], []>} : vector<8x8xbf16>, vector<8x32xbf16>, vector<8x32xf32> -> vector<8x32xf32>
    %56 = arith.addf %32, %55 : vector<8x32xf32>
    %57 = vector.extract_strided_slice %6 {offsets = [0, 16], sizes = [8, 8], strides = [1, 1]} : vector<8x32xbf16> to vector<8x8xbf16>
    %cst_27 = arith.constant dense<0.000000e+00> : vector<8x8xf32>
    %58 = tpu.matmul %57, %57, %cst_27 {dimension_numbers = #tpu.dot_dimension_numbers<[1], [1], [0], [0], [0, 0, 1, 0], [], []>} : vector<8x8xbf16>, vector<8x8xbf16>, vector<8x8xf32> -> vector<8x8xf32>
    %cst_28 = arith.constant 0.000000e+00 : f32
    %59 = vector.broadcast %cst_28 : f32 to vector<8x8xf32>
    %60 = arith.cmpf oeq, %5, %59 : vector<8x8xf32>
    %cst_29 = arith.constant -1.000000e+20 : f32
    %61 = vector.broadcast %cst_29 : f32 to vector<8x8xf32>
    %62 = arith.select %60, %61, %58 : vector<8x8xi1>, vector<8x8xf32>
    %cst_30 = arith.constant 0.176776692 : f32
    %63 = vector.broadcast %cst_30 : f32 to vector<8x8xf32>
    %64 = arith.mulf %62, %63 : vector<8x8xf32>
    %cst_31 = arith.constant dense<0xFF800000> : vector<8xf32>
    %65 = vector.multi_reduction <maximumf>, %64, %cst_31 [1] : vector<8x8xf32> to vector<8xf32>
    %66 = vector.shape_cast %65 : vector<8xf32> to vector<8x1xf32>
    %67 = vector.broadcast %66 : vector<8x1xf32> to vector<8x8xf32>
    %68 = arith.subf %64, %67 : vector<8x8xf32>
    %69 = math.exp %68 : vector<8x8xf32>
    %cst_32 = arith.constant dense<0.000000e+00> : vector<8xf32>
    %70 = vector.multi_reduction <add>, %69, %cst_32 [1] : vector<8x8xf32> to vector<8xf32>
    %71 = vector.shape_cast %70 : vector<8xf32> to vector<8x1xf32>
    %72 = tpu.reciprocal %71 {approx = true} : vector<8x1xf32> -> vector<8x1xf32>
    %73 = vector.broadcast %72 : vector<8x1xf32> to vector<8x8xf32>
    %74 = arith.mulf %69, %73 : vector<8x8xf32>
    %75 = arith.truncf %74 : vector<8x8xf32> to vector<8x8xbf16>
    %cst_33 = arith.constant dense<0.000000e+00> : vector<8x8xf32>
    %76 = tpu.matmul %75, %57, %cst_33 {dimension_numbers = #tpu.dot_dimension_numbers<[1], [0], [0], [1], [0, 0, 1, 1], [], []>} : vector<8x8xbf16>, vector<8x8xbf16>, vector<8x8xf32> -> vector<8x8xf32>
    %77 = arith.truncf %76 : vector<8x8xf32> to vector<8x8xbf16>
    %78 = vector.extract_strided_slice %7 {offsets = [16, 0], sizes = [8, 32], strides = [1, 1]} : vector<32x32xbf16> to vector<8x32xbf16>
    %cst_34 = arith.constant dense<0.000000e+00> : vector<8x32xf32>
    %79 = tpu.matmul %77, %78, %cst_34 {dimension_numbers = #tpu.dot_dimension_numbers<[1], [0], [0], [1], [0, 0, 1, 1], [], []>} : vector<8x8xbf16>, vector<8x32xbf16>, vector<8x32xf32> -> vector<8x32xf32>
    %80 = arith.addf %56, %79 : vector<8x32xf32>
    %81 = vector.extract_strided_slice %6 {offsets = [0, 24], sizes = [8, 8], strides = [1, 1]} : vector<8x32xbf16> to vector<8x8xbf16>
    %cst_35 = arith.constant dense<0.000000e+00> : vector<8x8xf32>
    %82 = tpu.matmul %81, %81, %cst_35 {dimension_numbers = #tpu.dot_dimension_numbers<[1], [1], [0], [0], [0, 0, 1, 0], [], []>} : vector<8x8xbf16>, vector<8x8xbf16>, vector<8x8xf32> -> vector<8x8xf32>
    %cst_36 = arith.constant 0.000000e+00 : f32
    %83 = vector.broadcast %cst_36 : f32 to vector<8x8xf32>
    %84 = arith.cmpf oeq, %5, %83 : vector<8x8xf32>
    %cst_37 = arith.constant -1.000000e+20 : f32
    %85 = vector.broadcast %cst_37 : f32 to vector<8x8xf32>
    %86 = arith.select %84, %85, %82 : vector<8x8xi1>, vector<8x8xf32>
    %cst_38 = arith.constant 0.176776692 : f32
    %87 = vector.broadcast %cst_38 : f32 to vector<8x8xf32>
    %88 = arith.mulf %86, %87 : vector<8x8xf32>
    %cst_39 = arith.constant dense<0xFF800000> : vector<8xf32>
    %89 = vector.multi_reduction <maximumf>, %88, %cst_39 [1] : vector<8x8xf32> to vector<8xf32>
    %90 = vector.shape_cast %89 : vector<8xf32> to vector<8x1xf32>
    %91 = vector.broadcast %90 : vector<8x1xf32> to vector<8x8xf32>
    %92 = arith.subf %88, %91 : vector<8x8xf32>
    %93 = math.exp %92 : vector<8x8xf32>
    %cst_40 = arith.constant dense<0.000000e+00> : vector<8xf32>
    %94 = vector.multi_reduction <add>, %93, %cst_40 [1] : vector<8x8xf32> to vector<8xf32>
    %95 = vector.shape_cast %94 : vector<8xf32> to vector<8x1xf32>
    %96 = tpu.reciprocal %95 {approx = true} : vector<8x1xf32> -> vector<8x1xf32>
    %97 = vector.broadcast %96 : vector<8x1xf32> to vector<8x8xf32>
    %98 = arith.mulf %93, %97 : vector<8x8xf32>
    %99 = arith.truncf %98 : vector<8x8xf32> to vector<8x8xbf16>
    %cst_41 = arith.constant dense<0.000000e+00> : vector<8x8xf32>
    %100 = tpu.matmul %99, %81, %cst_41 {dimension_numbers = #tpu.dot_dimension_numbers<[1], [0], [0], [1], [0, 0, 1, 1], [], []>} : vector<8x8xbf16>, vector<8x8xbf16>, vector<8x8xf32> -> vector<8x8xf32>
    %101 = arith.truncf %100 : vector<8x8xf32> to vector<8x8xbf16>
    %102 = vector.extract_strided_slice %7 {offsets = [24, 0], sizes = [8, 32], strides = [1, 1]} : vector<32x32xbf16> to vector<8x32xbf16>
    %cst_42 = arith.constant dense<0.000000e+00> : vector<8x32xf32>
    %103 = tpu.matmul %101, %102, %cst_42 {dimension_numbers = #tpu.dot_dimension_numbers<[1], [0], [0], [1], [0, 0, 1, 1], [], []>} : vector<8x8xbf16>, vector<8x32xbf16>, vector<8x32xf32> -> vector<8x32xf32>
    %104 = arith.addf %80, %103 : vector<8x32xf32>
    %c0_43 = arith.constant 0 : index
    %c0_44 = arith.constant 0 : index
    %105 = vector.load %arg6[%c0_43, %c0_44] : memref<1x32xf32, #tpu.memory_space<vmem>>, vector<1x32xf32>
    %106 = vector.shape_cast %105 : vector<1x32xf32> to vector<32xf32>
    %107 = vector.shape_cast %106 : vector<32xf32> to vector<1x32xf32>
    %108 = vector.broadcast %107 : vector<1x32xf32> to vector<8x32xf32>
    %109 = arith.addf %104, %108 : vector<8x32xf32>
    %110 = arith.addf %109, %1 : vector<8x32xf32>
    %c0_45 = arith.constant 0 : index
    %c0_46 = arith.constant 0 : index
    %111 = vector.load %arg7[%c0_45, %c0_46] : memref<1x32xf32, #tpu.memory_space<vmem>>, vector<1x32xf32>
    %112 = vector.shape_cast %111 : vector<1x32xf32> to vector<32xf32>
    %c0_47 = arith.constant 0 : index
    %c0_48 = arith.constant 0 : index
    %113 = vector.load %arg8[%c0_47, %c0_48] : memref<1x32xf32, #tpu.memory_space<vmem>>, vector<1x32xf32>
    %114 = vector.shape_cast %113 : vector<1x32xf32> to vector<32xf32>
    %cst_49 = arith.constant dense<0.000000e+00> : vector<8xf32>
    %115 = vector.multi_reduction <add>, %110, %cst_49 [1] : vector<8x32xf32> to vector<8xf32>
    %116 = vector.shape_cast %115 : vector<8xf32> to vector<8x1xf32>
    %cst_50 = arith.constant 3.200000e+01 : f32
    %117 = vector.broadcast %cst_50 : f32 to vector<8x1xf32>
    %118 = arith.divf %116, %117 : vector<8x1xf32>
    %119 = vector.broadcast %118 : vector<8x1xf32> to vector<8x32xf32>
    %120 = arith.subf %110, %119 : vector<8x32xf32>
    %121 = arith.mulf %120, %120 : vector<8x32xf32>
    %cst_51 = arith.constant dense<0.000000e+00> : vector<8xf32>
    %122 = vector.multi_reduction <add>, %121, %cst_51 [1] : vector<8x32xf32> to vector<8xf32>
    %123 = vector.shape_cast %122 : vector<8xf32> to vector<8x1xf32>
    %cst_52 = arith.constant 3.200000e+01 : f32
    %124 = vector.broadcast %cst_52 : f32 to vector<8x1xf32>
    %125 = arith.divf %123, %124 : vector<8x1xf32>
    %cst_53 = arith.constant 9.99999974E-6 : f32
    %126 = vector.broadcast %cst_53 : f32 to vector<8x1xf32>
    %127 = arith.addf %125, %126 : vector<8x1xf32>
    %128 = math.rsqrt %127 : vector<8x1xf32>
    %129 = vector.broadcast %128 : vector<8x1xf32> to vector<8x32xf32>
    %130 = arith.mulf %120, %129 : vector<8x32xf32>
    %131 = vector.shape_cast %112 : vector<32xf32> to vector<1x32xf32>
    %132 = vector.broadcast %131 : vector<1x32xf32> to vector<8x32xf32>
    %133 = arith.mulf %130, %132 : vector<8x32xf32>
    %134 = vector.shape_cast %114 : vector<32xf32> to vector<1x32xf32>
    %135 = vector.broadcast %134 : vector<1x32xf32> to vector<8x32xf32>
    %136 = arith.addf %133, %135 : vector<8x32xf32>
    %c0_54 = arith.constant 0 : index
    %c0_55 = arith.constant 0 : index
    %c0_56 = arith.constant 0 : index
    %c0_57 = arith.constant 0 : index
    %137 = vector.load %arg4[%c0_54, %c0_55, %c0_56, %c0_57] : memref<1x1x8x8xf32, #tpu.memory_space<vmem>>, vector<1x1x8x8xf32>
    %138 = vector.shape_cast %137 : vector<1x1x8x8xf32> to vector<8x8xf32>
    %139 = arith.truncf %3 : vector<8x32xf32> to vector<8x32xbf16>
    %c0_58 = arith.constant 0 : index
    %c0_59 = arith.constant 0 : index
    %140 = vector.load %arg9[%c0_58, %c0_59] : memref<32x32xbf16, #tpu.memory_space<vmem>>, vector<32x32xbf16>
    %cst_60 = arith.constant 0.000000e+00 : f32
    %141 = vector.broadcast %cst_60 : f32 to vector<8x32xf32>
    %142 = vector.extract_strided_slice %139 {offsets = [0, 0], sizes = [8, 8], strides = [1, 1]} : vector<8x32xbf16> to vector<8x8xbf16>
    %cst_61 = arith.constant dense<0.000000e+00> : vector<8x8xf32>
    %143 = tpu.matmul %142, %142, %cst_61 {dimension_numbers = #tpu.dot_dimension_numbers<[1], [1], [0], [0], [0, 0, 1, 0], [], []>} : vector<8x8xbf16>, vector<8x8xbf16>, vector<8x8xf32> -> vector<8x8xf32>
    %cst_62 = arith.constant 0.000000e+00 : f32
    %144 = vector.broadcast %cst_62 : f32 to vector<8x8xf32>
    %145 = arith.cmpf oeq, %138, %144 : vector<8x8xf32>
    %cst_63 = arith.constant -1.000000e+20 : f32
    %146 = vector.broadcast %cst_63 : f32 to vector<8x8xf32>
    %147 = arith.select %145, %146, %143 : vector<8x8xi1>, vector<8x8xf32>
    %cst_64 = arith.constant 0.176776692 : f32
    %148 = vector.broadcast %cst_64 : f32 to vector<8x8xf32>
    %149 = arith.mulf %147, %148 : vector<8x8xf32>
    %cst_65 = arith.constant dense<0xFF800000> : vector<8xf32>
    %150 = vector.multi_reduction <maximumf>, %149, %cst_65 [1] : vector<8x8xf32> to vector<8xf32>
    %151 = vector.shape_cast %150 : vector<8xf32> to vector<8x1xf32>
    %152 = vector.broadcast %151 : vector<8x1xf32> to vector<8x8xf32>
    %153 = arith.subf %149, %152 : vector<8x8xf32>
    %154 = math.exp %153 : vector<8x8xf32>
    %cst_66 = arith.constant dense<0.000000e+00> : vector<8xf32>
    %155 = vector.multi_reduction <add>, %154, %cst_66 [1] : vector<8x8xf32> to vector<8xf32>
    %156 = vector.shape_cast %155 : vector<8xf32> to vector<8x1xf32>
    %157 = tpu.reciprocal %156 {approx = true} : vector<8x1xf32> -> vector<8x1xf32>
    %158 = vector.broadcast %157 : vector<8x1xf32> to vector<8x8xf32>
    %159 = arith.mulf %154, %158 : vector<8x8xf32>
    %160 = arith.truncf %159 : vector<8x8xf32> to vector<8x8xbf16>
    %cst_67 = arith.constant dense<0.000000e+00> : vector<8x8xf32>
    %161 = tpu.matmul %160, %142, %cst_67 {dimension_numbers = #tpu.dot_dimension_numbers<[1], [0], [0], [1], [0, 0, 1, 1], [], []>} : vector<8x8xbf16>, vector<8x8xbf16>, vector<8x8xf32> -> vector<8x8xf32>
    %162 = arith.truncf %161 : vector<8x8xf32> to vector<8x8xbf16>
    %163 = vector.extract_strided_slice %140 {offsets = [0, 0], sizes = [8, 32], strides = [1, 1]} : vector<32x32xbf16> to vector<8x32xbf16>
    %cst_68 = arith.constant dense<0.000000e+00> : vector<8x32xf32>
    %164 = tpu.matmul %162, %163, %cst_68 {dimension_numbers = #tpu.dot_dimension_numbers<[1], [0], [0], [1], [0, 0, 1, 1], [], []>} : vector<8x8xbf16>, vector<8x32xbf16>, vector<8x32xf32> -> vector<8x32xf32>
    %165 = arith.addf %141, %164 : vector<8x32xf32>
    %166 = vector.extract_strided_slice %139 {offsets = [0, 8], sizes = [8, 8], strides = [1, 1]} : vector<8x32xbf16> to vector<8x8xbf16>
    %cst_69 = arith.constant dense<0.000000e+00> : vector<8x8xf32>
    %167 = tpu.matmul %166, %166, %cst_69 {dimension_numbers = #tpu.dot_dimension_numbers<[1], [1], [0], [0], [0, 0, 1, 0], [], []>} : vector<8x8xbf16>, vector<8x8xbf16>, vector<8x8xf32> -> vector<8x8xf32>
    %cst_70 = arith.constant 0.000000e+00 : f32
    %168 = vector.broadcast %cst_70 : f32 to vector<8x8xf32>
    %169 = arith.cmpf oeq, %138, %168 : vector<8x8xf32>
    %cst_71 = arith.constant -1.000000e+20 : f32
    %170 = vector.broadcast %cst_71 : f32 to vector<8x8xf32>
    %171 = arith.select %169, %170, %167 : vector<8x8xi1>, vector<8x8xf32>
    %cst_72 = arith.constant 0.176776692 : f32
    %172 = vector.broadcast %cst_72 : f32 to vector<8x8xf32>
    %173 = arith.mulf %171, %172 : vector<8x8xf32>
    %cst_73 = arith.constant dense<0xFF800000> : vector<8xf32>
    %174 = vector.multi_reduction <maximumf>, %173, %cst_73 [1] : vector<8x8xf32> to vector<8xf32>
    %175 = vector.shape_cast %174 : vector<8xf32> to vector<8x1xf32>
    %176 = vector.broadcast %175 : vector<8x1xf32> to vector<8x8xf32>
    %177 = arith.subf %173, %176 : vector<8x8xf32>
    %178 = math.exp %177 : vector<8x8xf32>
    %cst_74 = arith.constant dense<0.000000e+00> : vector<8xf32>
    %179 = vector.multi_reduction <add>, %178, %cst_74 [1] : vector<8x8xf32> to vector<8xf32>
    %180 = vector.shape_cast %179 : vector<8xf32> to vector<8x1xf32>
    %181 = tpu.reciprocal %180 {approx = true} : vector<8x1xf32> -> vector<8x1xf32>
    %182 = vector.broadcast %181 : vector<8x1xf32> to vector<8x8xf32>
    %183 = arith.mulf %178, %182 : vector<8x8xf32>
    %184 = arith.truncf %183 : vector<8x8xf32> to vector<8x8xbf16>
    %cst_75 = arith.constant dense<0.000000e+00> : vector<8x8xf32>
    %185 = tpu.matmul %184, %166, %cst_75 {dimension_numbers = #tpu.dot_dimension_numbers<[1], [0], [0], [1], [0, 0, 1, 1], [], []>} : vector<8x8xbf16>, vector<8x8xbf16>, vector<8x8xf32> -> vector<8x8xf32>
    %186 = arith.truncf %185 : vector<8x8xf32> to vector<8x8xbf16>
    %187 = vector.extract_strided_slice %140 {offsets = [8, 0], sizes = [8, 32], strides = [1, 1]} : vector<32x32xbf16> to vector<8x32xbf16>
    %cst_76 = arith.constant dense<0.000000e+00> : vector<8x32xf32>
    %188 = tpu.matmul %186, %187, %cst_76 {dimension_numbers = #tpu.dot_dimension_numbers<[1], [0], [0], [1], [0, 0, 1, 1], [], []>} : vector<8x8xbf16>, vector<8x32xbf16>, vector<8x32xf32> -> vector<8x32xf32>
    %189 = arith.addf %165, %188 : vector<8x32xf32>
    %190 = vector.extract_strided_slice %139 {offsets = [0, 16], sizes = [8, 8], strides = [1, 1]} : vector<8x32xbf16> to vector<8x8xbf16>
    %cst_77 = arith.constant dense<0.000000e+00> : vector<8x8xf32>
    %191 = tpu.matmul %190, %190, %cst_77 {dimension_numbers = #tpu.dot_dimension_numbers<[1], [1], [0], [0], [0, 0, 1, 0], [], []>} : vector<8x8xbf16>, vector<8x8xbf16>, vector<8x8xf32> -> vector<8x8xf32>
    %cst_78 = arith.constant 0.000000e+00 : f32
    %192 = vector.broadcast %cst_78 : f32 to vector<8x8xf32>
    %193 = arith.cmpf oeq, %138, %192 : vector<8x8xf32>
    %cst_79 = arith.constant -1.000000e+20 : f32
    %194 = vector.broadcast %cst_79 : f32 to vector<8x8xf32>
    %195 = arith.select %193, %194, %191 : vector<8x8xi1>, vector<8x8xf32>
    %cst_80 = arith.constant 0.176776692 : f32
    %196 = vector.broadcast %cst_80 : f32 to vector<8x8xf32>
    %197 = arith.mulf %195, %196 : vector<8x8xf32>
    %cst_81 = arith.constant dense<0xFF800000> : vector<8xf32>
    %198 = vector.multi_reduction <maximumf>, %197, %cst_81 [1] : vector<8x8xf32> to vector<8xf32>
    %199 = vector.shape_cast %198 : vector<8xf32> to vector<8x1xf32>
    %200 = vector.broadcast %199 : vector<8x1xf32> to vector<8x8xf32>
    %201 = arith.subf %197, %200 : vector<8x8xf32>
    %202 = math.exp %201 : vector<8x8xf32>
    %cst_82 = arith.constant dense<0.000000e+00> : vector<8xf32>
    %203 = vector.multi_reduction <add>, %202, %cst_82 [1] : vector<8x8xf32> to vector<8xf32>
    %204 = vector.shape_cast %203 : vector<8xf32> to vector<8x1xf32>
    %205 = tpu.reciprocal %204 {approx = true} : vector<8x1xf32> -> vector<8x1xf32>
    %206 = vector.broadcast %205 : vector<8x1xf32> to vector<8x8xf32>
    %207 = arith.mulf %202, %206 : vector<8x8xf32>
    %208 = arith.truncf %207 : vector<8x8xf32> to vector<8x8xbf16>
    %cst_83 = arith.constant dense<0.000000e+00> : vector<8x8xf32>
    %209 = tpu.matmul %208, %190, %cst_83 {dimension_numbers = #tpu.dot_dimension_numbers<[1], [0], [0], [1], [0, 0, 1, 1], [], []>} : vector<8x8xbf16>, vector<8x8xbf16>, vector<8x8xf32> -> vector<8x8xf32>
    %210 = arith.truncf %209 : vector<8x8xf32> to vector<8x8xbf16>
    %211 = vector.extract_strided_slice %140 {offsets = [16, 0], sizes = [8, 32], strides = [1, 1]} : vector<32x32xbf16> to vector<8x32xbf16>
    %cst_84 = arith.constant dense<0.000000e+00> : vector<8x32xf32>
    %212 = tpu.matmul %210, %211, %cst_84 {dimension_numbers = #tpu.dot_dimension_numbers<[1], [0], [0], [1], [0, 0, 1, 1], [], []>} : vector<8x8xbf16>, vector<8x32xbf16>, vector<8x32xf32> -> vector<8x32xf32>
    %213 = arith.addf %189, %212 : vector<8x32xf32>
    %214 = vector.extract_strided_slice %139 {offsets = [0, 24], sizes = [8, 8], strides = [1, 1]} : vector<8x32xbf16> to vector<8x8xbf16>
    %cst_85 = arith.constant dense<0.000000e+00> : vector<8x8xf32>
    %215 = tpu.matmul %214, %214, %cst_85 {dimension_numbers = #tpu.dot_dimension_numbers<[1], [1], [0], [0], [0, 0, 1, 0], [], []>} : vector<8x8xbf16>, vector<8x8xbf16>, vector<8x8xf32> -> vector<8x8xf32>
    %cst_86 = arith.constant 0.000000e+00 : f32
    %216 = vector.broadcast %cst_86 : f32 to vector<8x8xf32>
    %217 = arith.cmpf oeq, %138, %216 : vector<8x8xf32>
    %cst_87 = arith.constant -1.000000e+20 : f32
    %218 = vector.broadcast %cst_87 : f32 to vector<8x8xf32>
    %219 = arith.select %217, %218, %215 : vector<8x8xi1>, vector<8x8xf32>
    %cst_88 = arith.constant 0.176776692 : f32
    %220 = vector.broadcast %cst_88 : f32 to vector<8x8xf32>
    %221 = arith.mulf %219, %220 : vector<8x8xf32>
    %cst_89 = arith.constant dense<0xFF800000> : vector<8xf32>
    %222 = vector.multi_reduction <maximumf>, %221, %cst_89 [1] : vector<8x8xf32> to vector<8xf32>
    %223 = vector.shape_cast %222 : vector<8xf32> to vector<8x1xf32>
    %224 = vector.broadcast %223 : vector<8x1xf32> to vector<8x8xf32>
    %225 = arith.subf %221, %224 : vector<8x8xf32>
    %226 = math.exp %225 : vector<8x8xf32>
    %cst_90 = arith.constant dense<0.000000e+00> : vector<8xf32>
    %227 = vector.multi_reduction <add>, %226, %cst_90 [1] : vector<8x8xf32> to vector<8xf32>
    %228 = vector.shape_cast %227 : vector<8xf32> to vector<8x1xf32>
    %229 = tpu.reciprocal %228 {approx = true} : vector<8x1xf32> -> vector<8x1xf32>
    %230 = vector.broadcast %229 : vector<8x1xf32> to vector<8x8xf32>
    %231 = arith.mulf %226, %230 : vector<8x8xf32>
    %232 = arith.truncf %231 : vector<8x8xf32> to vector<8x8xbf16>
    %cst_91 = arith.constant dense<0.000000e+00> : vector<8x8xf32>
    %233 = tpu.matmul %232, %214, %cst_91 {dimension_numbers = #tpu.dot_dimension_numbers<[1], [0], [0], [1], [0, 0, 1, 1], [], []>} : vector<8x8xbf16>, vector<8x8xbf16>, vector<8x8xf32> -> vector<8x8xf32>
    %234 = arith.truncf %233 : vector<8x8xf32> to vector<8x8xbf16>
    %235 = vector.extract_strided_slice %140 {offsets = [24, 0], sizes = [8, 32], strides = [1, 1]} : vector<32x32xbf16> to vector<8x32xbf16>
    %cst_92 = arith.constant dense<0.000000e+00> : vector<8x32xf32>
    %236 = tpu.matmul %234, %235, %cst_92 {dimension_numbers = #tpu.dot_dimension_numbers<[1], [0], [0], [1], [0, 0, 1, 1], [], []>} : vector<8x8xbf16>, vector<8x32xbf16>, vector<8x32xf32> -> vector<8x32xf32>
    %237 = arith.addf %213, %236 : vector<8x32xf32>
    %c0_93 = arith.constant 0 : index
    %c0_94 = arith.constant 0 : index
    %238 = vector.load %arg10[%c0_93, %c0_94] : memref<1x32xf32, #tpu.memory_space<vmem>>, vector<1x32xf32>
    %239 = vector.shape_cast %238 : vector<1x32xf32> to vector<32xf32>
    %240 = vector.shape_cast %239 : vector<32xf32> to vector<1x32xf32>
    %241 = vector.broadcast %240 : vector<1x32xf32> to vector<8x32xf32>
    %242 = arith.addf %237, %241 : vector<8x32xf32>
    %243 = arith.addf %242, %136 : vector<8x32xf32>
    %c0_95 = arith.constant 0 : index
    %c0_96 = arith.constant 0 : index
    %244 = vector.load %arg11[%c0_95, %c0_96] : memref<1x32xf32, #tpu.memory_space<vmem>>, vector<1x32xf32>
    %245 = vector.shape_cast %244 : vector<1x32xf32> to vector<32xf32>
    %c0_97 = arith.constant 0 : index
    %c0_98 = arith.constant 0 : index
    %246 = vector.load %arg12[%c0_97, %c0_98] : memref<1x32xf32, #tpu.memory_space<vmem>>, vector<1x32xf32>
    %247 = vector.shape_cast %246 : vector<1x32xf32> to vector<32xf32>
    %cst_99 = arith.constant dense<0.000000e+00> : vector<8xf32>
    %248 = vector.multi_reduction <add>, %243, %cst_99 [1] : vector<8x32xf32> to vector<8xf32>
    %249 = vector.shape_cast %248 : vector<8xf32> to vector<8x1xf32>
    %cst_100 = arith.constant 3.200000e+01 : f32
    %250 = vector.broadcast %cst_100 : f32 to vector<8x1xf32>
    %251 = arith.divf %249, %250 : vector<8x1xf32>
    %252 = vector.broadcast %251 : vector<8x1xf32> to vector<8x32xf32>
    %253 = arith.subf %243, %252 : vector<8x32xf32>
    %254 = arith.mulf %253, %253 : vector<8x32xf32>
    %cst_101 = arith.constant dense<0.000000e+00> : vector<8xf32>
    %255 = vector.multi_reduction <add>, %254, %cst_101 [1] : vector<8x32xf32> to vector<8xf32>
    %256 = vector.shape_cast %255 : vector<8xf32> to vector<8x1xf32>
    %cst_102 = arith.constant 3.200000e+01 : f32
    %257 = vector.broadcast %cst_102 : f32 to vector<8x1xf32>
    %258 = arith.divf %256, %257 : vector<8x1xf32>
    %cst_103 = arith.constant 9.99999974E-6 : f32
    %259 = vector.broadcast %cst_103 : f32 to vector<8x1xf32>
    %260 = arith.addf %258, %259 : vector<8x1xf32>
    %261 = math.rsqrt %260 : vector<8x1xf32>
    %262 = vector.broadcast %261 : vector<8x1xf32> to vector<8x32xf32>
    %263 = arith.mulf %253, %262 : vector<8x32xf32>
    %264 = vector.shape_cast %245 : vector<32xf32> to vector<1x32xf32>
    %265 = vector.broadcast %264 : vector<1x32xf32> to vector<8x32xf32>
    %266 = arith.mulf %263, %265 : vector<8x32xf32>
    %267 = vector.shape_cast %247 : vector<32xf32> to vector<1x32xf32>
    %268 = vector.broadcast %267 : vector<1x32xf32> to vector<8x32xf32>
    %269 = arith.addf %266, %268 : vector<8x32xf32>
    %270 = arith.truncf %269 : vector<8x32xf32> to vector<8x32xbf16>
    %c0_104 = arith.constant 0 : index
    %c0_105 = arith.constant 0 : index
    %271 = vector.load %arg13[%c0_104, %c0_105] : memref<32x64xbf16, #tpu.memory_space<vmem>>, vector<32x64xbf16>
    %cst_106 = arith.constant dense<0.000000e+00> : vector<8x64xf32>
    %272 = tpu.matmul %270, %271, %cst_106 {dimension_numbers = #tpu.dot_dimension_numbers<[1], [0], [0], [1], [0, 0, 1, 1], [], []>} : vector<8x32xbf16>, vector<32x64xbf16>, vector<8x64xf32> -> vector<8x64xf32>
    %c0_107 = arith.constant 0 : index
    %c0_108 = arith.constant 0 : index
    %273 = vector.load %arg14[%c0_107, %c0_108] : memref<1x64xf32, #tpu.memory_space<vmem>>, vector<1x64xf32>
    %274 = vector.shape_cast %273 : vector<1x64xf32> to vector<64xf32>
    %275 = vector.shape_cast %274 : vector<64xf32> to vector<1x64xf32>
    %276 = vector.broadcast %275 : vector<1x64xf32> to vector<8x64xf32>
    %277 = arith.addf %272, %276 : vector<8x64xf32>
    %cst_109 = arith.constant 0.000000e+00 : f32
    %278 = vector.broadcast %cst_109 : f32 to vector<8x64xf32>
    %279 = arith.maximumf %277, %278 : vector<8x64xf32>
    %280 = arith.truncf %279 : vector<8x64xf32> to vector<8x64xbf16>
    %c0_110 = arith.constant 0 : index
    %c0_111 = arith.constant 0 : index
    %281 = vector.load %arg15[%c0_110, %c0_111] : memref<64x32xbf16, #tpu.memory_space<vmem>>, vector<64x32xbf16>
    %cst_112 = arith.constant dense<0.000000e+00> : vector<8x32xf32>
    %282 = tpu.matmul %280, %281, %cst_112 {dimension_numbers = #tpu.dot_dimension_numbers<[1], [0], [0], [1], [0, 0, 1, 1], [], []>} : vector<8x64xbf16>, vector<64x32xbf16>, vector<8x32xf32> -> vector<8x32xf32>
    %c0_113 = arith.constant 0 : index
    %c0_114 = arith.constant 0 : index
    %283 = vector.load %arg16[%c0_113, %c0_114] : memref<1x32xf32, #tpu.memory_space<vmem>>, vector<1x32xf32>
    %284 = vector.shape_cast %283 : vector<1x32xf32> to vector<32xf32>
    %285 = vector.shape_cast %284 : vector<32xf32> to vector<1x32xf32>
    %286 = vector.broadcast %285 : vector<1x32xf32> to vector<8x32xf32>
    %287 = arith.addf %282, %286 : vector<8x32xf32>
    %288 = arith.addf %287, %269 : vector<8x32xf32>
    %c0_115 = arith.constant 0 : index
    %c0_116 = arith.constant 0 : index
    %289 = vector.load %arg17[%c0_115, %c0_116] : memref<1x32xf32, #tpu.memory_space<vmem>>, vector<1x32xf32>
    %290 = vector.shape_cast %289 : vector<1x32xf32> to vector<32xf32>
    %c0_117 = arith.constant 0 : index
    %c0_118 = arith.constant 0 : index
    %291 = vector.load %arg18[%c0_117, %c0_118] : memref<1x32xf32, #tpu.memory_space<vmem>>, vector<1x32xf32>
    %292 = vector.shape_cast %291 : vector<1x32xf32> to vector<32xf32>
    %cst_119 = arith.constant dense<0.000000e+00> : vector<8xf32>
    %293 = vector.multi_reduction <add>, %288, %cst_119 [1] : vector<8x32xf32> to vector<8xf32>
    %294 = vector.shape_cast %293 : vector<8xf32> to vector<8x1xf32>
    %cst_120 = arith.constant 3.200000e+01 : f32
    %295 = vector.broadcast %cst_120 : f32 to vector<8x1xf32>
    %296 = arith.divf %294, %295 : vector<8x1xf32>
    %297 = vector.broadcast %296 : vector<8x1xf32> to vector<8x32xf32>
    %298 = arith.subf %288, %297 : vector<8x32xf32>
    %299 = arith.mulf %298, %298 : vector<8x32xf32>
    %cst_121 = arith.constant dense<0.000000e+00> : vector<8xf32>
    %300 = vector.multi_reduction <add>, %299, %cst_121 [1] : vector<8x32xf32> to vector<8xf32>
    %301 = vector.shape_cast %300 : vector<8xf32> to vector<8x1xf32>
    %cst_122 = arith.constant 3.200000e+01 : f32
    %302 = vector.broadcast %cst_122 : f32 to vector<8x1xf32>
    %303 = arith.divf %301, %302 : vector<8x1xf32>
    %cst_123 = arith.constant 9.99999974E-6 : f32
    %304 = vector.broadcast %cst_123 : f32 to vector<8x1xf32>
    %305 = arith.addf %303, %304 : vector<8x1xf32>
    %306 = math.rsqrt %305 : vector<8x1xf32>
    %307 = vector.broadcast %306 : vector<8x1xf32> to vector<8x32xf32>
    %308 = arith.mulf %298, %307 : vector<8x32xf32>
    %309 = vector.shape_cast %290 : vector<32xf32> to vector<1x32xf32>
    %310 = vector.broadcast %309 : vector<1x32xf32> to vector<8x32xf32>
    %311 = arith.mulf %308, %310 : vector<8x32xf32>
    %312 = vector.shape_cast %292 : vector<32xf32> to vector<1x32xf32>
    %313 = vector.broadcast %312 : vector<1x32xf32> to vector<8x32xf32>
    %314 = arith.addf %311, %313 : vector<8x32xf32>
    %c0_124 = arith.constant 0 : index
    %c0_125 = arith.constant 0 : index
    %c0_126 = arith.constant 0 : index
    %315 = vector.load %arg19[%c0_124, %c0_125, %c0_126] : memref<1x8x32xf32, #tpu.memory_space<vmem>>, vector<1x8x32xf32>
    %316 = vector.shape_cast %315 : vector<1x8x32xf32> to vector<8x32xf32>
    %317 = vector.shape_cast %314 : vector<8x32xf32> to vector<1x8x32xf32>
    tpu.vector_store %arg19[%c0_124, %c0_125, %c0_126], %317 {strides = array<i32>} : memref<1x8x32xf32, #tpu.memory_space<vmem>>, vector<1x8x32xf32>,
    return
  }
  func.func @transform_0(%arg0: i32) -> (i32, i32, i32) {
    %c0_i32 = arith.constant 0 : i32
    %c0_i32_0 = arith.constant 0 : i32
    %c0_i32_1 = arith.constant 0 : i32
    return %arg0, %c0_i32, %c0_i32_0 : i32, i32, i32
  }
  func.func @transform_1(%arg0: i32) -> (i32, i32, i32) {
    %c0_i32 = arith.constant 0 : i32
    %c0_i32_0 = arith.constant 0 : i32
    %c0_i32_1 = arith.constant 0 : i32
    return %arg0, %c0_i32, %c0_i32_0 : i32, i32, i32
  }
  func.func @transform_2(%arg0: i32) -> (i32, i32, i32, i32) {
    %c0_i32 = arith.constant 0 : i32
    %c0_i32_0 = arith.constant 0 : i32
    %c0_i32_1 = arith.constant 0 : i32
    %c0_i32_2 = arith.constant 0 : i32
    return %arg0, %c0_i32, %c0_i32_0, %c0_i32_1 : i32, i32, i32, i32
  }
  func.func @transform_3(%arg0: i32) -> (i32, i32, i32, i32) {
    %c0_i32 = arith.constant 0 : i32
    %c0_i32_0 = arith.constant 0 : i32
    %c0_i32_1 = arith.constant 0 : i32
    %c0_i32_2 = arith.constant 0 : i32
    return %arg0, %c0_i32, %c0_i32_0, %c0_i32_1 : i32, i32, i32, i32
  }
  func.func @transform_4(%arg0: i32) -> (i32, i32) {
    %c0_i32 = arith.constant 0 : i32
    %c0_i32_0 = arith.constant 0 : i32
    %c0_i32_1 = arith.constant 0 : i32
    return %c0_i32, %c0_i32_0 : i32, i32
  }
  func.func @transform_5(%arg0: i32) -> (i32, i32) {
    %c0_i32 = arith.constant 0 : i32
    %c0_i32_0 = arith.constant 0 : i32
    %c0_i32_1 = arith.constant 0 : i32
    return %c0_i32, %c0_i32_0 : i32, i32
  }
  func.func @transform_6(%arg0: i32) -> (i32, i32) {
    %c0_i32 = arith.constant 0 : i32
    %c0_i32_0 = arith.constant 0 : i32
    %c0_i32_1 = arith.constant 0 : i32
    return %c0_i32, %c0_i32_0 : i32, i32
  }
  func.func @transform_7(%arg0: i32) -> (i32, i32) {
    %c0_i32 = arith.constant 0 : i32
    %c0_i32_0 = arith.constant 0 : i32
    %c0_i32_1 = arith.constant 0 : i32
    return %c0_i32, %c0_i32_0 : i32, i32
  }
  func.func @transform_8(%arg0: i32) -> (i32, i32) {
    %c0_i32 = arith.constant 0 : i32
    %c0_i32_0 = arith.constant 0 : i32
    %c0_i32_1 = arith.constant 0 : i32
    return %c0_i32, %c0_i32_0 : i32, i32
  }
  func.func @transform_9(%arg0: i32) -> (i32, i32) {
    %c0_i32 = arith.constant 0 : i32
    %c0_i32_0 = arith.constant 0 : i32
    %c0_i32_1 = arith.constant 0 : i32
    return %c0_i32, %c0_i32_0 : i32, i32
  }
  func.func @transform_10(%arg0: i32) -> (i32, i32) {
    %c0_i32 = arith.constant 0 : i32
    %c0_i32_0 = arith.constant 0 : i32
    %c0_i32_1 = arith.constant 0 : i32
    return %c0_i32, %c0_i32_0 : i32, i32
  }
  func.func @transform_11(%arg0: i32) -> (i32, i32) {
    %c0_i32 = arith.constant 0 : i32
    %c0_i32_0 = arith.constant 0 : i32
    %c0_i32_1 = arith.constant 0 : i32
    return %c0_i32, %c0_i32_0 : i32, i32
  }
  func.func @transform_12(%arg0: i32) -> (i32, i32) {
    %c0_i32 = arith.constant 0 : i32
    %c0_i32_0 = arith.constant 0 : i32
    %c0_i32_1 = arith.constant 0 : i32
    return %c0_i32, %c0_i32_0 : i32, i32
  }
  func.func @transform_13(%arg0: i32) -> (i32, i32) {
    %c0_i32 = arith.constant 0 : i32
    %c0_i32_0 = arith.constant 0 : i32
    %c0_i32_1 = arith.constant 0 : i32
    return %c0_i32, %c0_i32_0 : i32, i32
  }
  func.func @transform_14(%arg0: i32) -> (i32, i32) {
    %c0_i32 = arith.constant 0 : i32
    %c0_i32_0 = arith.constant 0 : i32
    %c0_i32_1 = arith.constant 0 : i32
    return %c0_i32, %c0_i32_0 : i32, i32
  }
  func.func @transform_15(%arg0: i32) -> (i32, i32) {
    %c0_i32 = arith.constant 0 : i32
    %c0_i32_0 = arith.constant 0 : i32
    %c0_i32_1 = arith.constant 0 : i32
    return %c0_i32, %c0_i32_0 : i32, i32
  }
  func.func @transform_16(%arg0: i32) -> (i32, i32) {
    %c0_i32 = arith.constant 0 : i32
    %c0_i32_0 = arith.constant 0 : i32
    %c0_i32_1 = arith.constant 0 : i32
    return %c0_i32, %c0_i32_0 : i32, i32
  }
  func.func @transform_17(%arg0: i32) -> (i32, i32) {
    %c0_i32 = arith.constant 0 : i32
    %c0_i32_0 = arith.constant 0 : i32
    %c0_i32_1 = arith.constant 0 : i32
    return %c0_i32, %c0_i32_0 : i32, i32
  }
  func.func @transform_18(%arg0: i32) -> (i32, i32, i32) {
    %c0_i32 = arith.constant 0 : i32
    %c0_i32_0 = arith.constant 0 : i32
    %c0_i32_1 = arith.constant 0 : i32
    return %arg0, %c0_i32, %c0_i32_0 : i32, i32, i32
  }
}

</mosaic_0001>

<bundles_post_ra>
// kernel: tpu_custom_call.1
= control target key start
LH: loop header
LB: loop body
LE: loop exit
PB: predicated region body
PF: predicated region fallthrough
CT: control target
= control target key end

     0   :  { %s3703_s0 = inlined_call_operand.vmem [shape: f32[2,8,32], index: 0, kind: input, shape index: {}]   ;;  %s3704_s1 = inlined_call_operand.vmem [shape: f32[2,8,32], index: 1, kind: input, shape index: {}]   ;;  %s3705_s2 = inlined_call_operand.vmem [shape: f32[2,1,8,8], index: 2, kind: input, shape index: {}]   ;;  %s3706_s3 = inlined_call_operand.hbm [shape: f32[2,1,8,8], index: 3, kind: input, shape index: {}]   ;;  %s3707_s4 = inlined_call_operand.hbm [shape: bf16[32,32], index: 4, kind: input, shape index: {}]   ;;  %s3708_s5 = inlined_call_operand.hbm [shape: f32[1,32], index: 5, kind: input, shape index: {}]   ;;  %s3709_s6 = inlined_call_operand.hbm [shape: f32[1,32], index: 6, kind: input, shape index: {}]   ;;  %s3710_s7 = inlined_call_operand.hbm [shape: f32[1,32], index: 7, kind: input, shape index: {}]   ;;  %s3711_s8 = inlined_call_operand.hbm [shape: bf16[32,32], index: 8, kind: input, shape index: {}]   ;;  %s3712_s9 = inlined_call_operand.hbm [shape: f32[1,32], index: 9, kind: input, shape index: {}]   ;;  %s3713_s10 = inlined_call_operand.vmem [shape: f32[1,32], index: 10, kind: input, shape index: {}]   ;;  %s3714_s11 = inlined_call_operand.vmem [shape: f32[1,32], index: 11, kind: input, shape index: {}]   ;;  %s3715_s12 = inlined_call_operand.vmem [shape: bf16[32,64], index: 12, kind: input, shape index: {}]   ;;  %s3716_s13 = inlined_call_operand.vmem [shape: f32[1,64], index: 13, kind: input, shape index: {}]   ;;  %s3717_s14 = inlined_call_operand.vmem [shape: bf16[64,32], index: 14, kind: input, shape index: {}]   ;;  %s3718_s15 = inlined_call_operand.vmem [shape: f32[1,32], index: 15, kind: input, shape index: {}]   ;;  %s3719_s16 = inlined_call_operand.vmem [shape: f32[1,32], index: 16, kind: input, shape index: {}]   ;;  %s3720_s17 = inlined_call_operand.vmem [shape: f32[1,32], index: 17, kind: input, shape index: {}]   ;;  %s3721_s18 = inlined_call_operand.hbm [shape: f32[2,8,32], index: 18, kind: output, shape index: {}]  }
   0x1   :  { %3727 = sst [smem:[#allocation20_spill]] %s3703_s0 }
   0x2   :  { %3728 = sst [smem:[#allocation21_spill]] %s3704_s1 }
   0x3   :  { %3729 = sst [smem:[#allocation22_spill]] %s3705_s2 }
   0x4   :  { %3730 = sst [smem:[#allocation23_spill]] %s3707_s4 }
   0x5   :  { %3731 = sst [smem:[#allocation24_spill]] %s3708_s5 }
   0x6   :  { %3732 = sst [smem:[#allocation25_spill]] %s3709_s6 }
   0x7   :  { %3733 = sst [smem:[#allocation26_spill]] %s3710_s7 }
   0x8   :  { %3734 = sst [smem:[#allocation27_spill]] %s3711_s8 }
   0x9   :  { %3735 = sst [smem:[#allocation28_spill]] %s3712_s9 }
   0xa   :  { %3736 = sst [smem:[#allocation29_spill]] %s3718_s15 }
   0xb   :  { %3737 = sst [smem:[#allocation30_spill]] %s3719_s16 }
   0xc   :  { %3738 = sst [smem:[#allocation31_spill]] %s3720_s17 }
   0xd   :  { %3739 = sst [smem:[#allocation32_spill]] %s3721_s18 }
   0xe   :  { %23 = vsyncpa [#allocation3], 0 }
   0xf   :  { %25 = vsyncpa [#allocation3 + $0x1], 0 }
  0x10   :  { %26 = vsyncpa [#allocation6], 0 }
  0x11   :  { %27 = vsyncpa [#allocation9], 0 }
  0x12   :  { %28 = vsyncpa [#allocation12], 0 }
  0x13   :  { %29 = vsyncpa [#allocation4], 0 }
  0x14   :  { %31 = vsyncpa [#allocation4 + $0x1], 0  ;;  %s3207_s27 = smov 0   ;;  %s3209_s28 = smov 0  }
  0x15   :  { %s3211_s29 = smov 0   ;;  %s3213_s30 = smov 0  }
  0x16 LB: > { %s3097_s0 = smov [#allocation5]   ;;  %s3228_s1 = sadd.s32 4294967295, %s3095_s30   ;;  %s3095_s30 = sphi %s3213_s30, %s3776_s30   ;;  %s3091_s29 = sphi %s3211_s29, %s3775_s29   ;;  %s3087_s28 = sphi %s3209_s28, %s3774_s28   ;;  %s3083_s27 = sphi %s3207_s27, %s3773_s27  }
  0x17   : > { %s478_s19 = sshll.u32 %s3097_s0, 4  ;;  %p2389_p0 = scmp.ge.s32.totalorder %s3095_s30, 1  ;;  %s479_s19 = int_to_ptr.vmem [resolvable:$true] %s478_s19 }
  0x18   : > { %p3723_p1 = scmp.eq.s32.totalorder %s3228_s1, 0  ;;  %p466_p2 = scmp.lt.s32.totalorder %s3095_s30, 3 }
  0x19   : > { %s3098_s21 = smov [#allocation8]   ;;  %s3099_s23 = smov [#allocation11]  }
  0x1a   : > { %p3233_p3 = pnand %p2389_p0, %p466_p2  ;;  %s503_s22 = sshll.u32 %s3098_s21, 4  ;;  %s504_s22 = int_to_ptr.vmem [resolvable:$true] %s503_s22 }
  0x1b   : > { %s524_s24 = sshll.u32 %s3099_s23, 4  ;;  %s2846_s26 = scalar_lea.vmem %s479_s19, 256  ;;  %s3246_s24 = int_to_ptr.vmem [resolvable:$true] %s524_s24 }
  0x1c   : > { %s3740_s20 = scalar_select %p3233_p3, 1, 0 }
  0x1d   : > { %p2705_p5 = pneg %p3233_p3  ;;  %p2847_p8 = scmp.ne.s32.totalorder %s479_s19, %s2846_s26 }
  0x1e   : > { %p2854_p11 = scmp.lt.s32.totalorder %s479_s19, %s479_s19  ;;  %p2855_p12 = scmp.lt.s32.totalorder %s2846_s26, %s2846_s26 }
  0x1f   : > { %p3242_p6 = pnand %p2705_p5, %p3723_p1 }
  0x20   : > { %p2856_p13 = por %p2855_p12, %p2854_p11 }
  0x21   : > { %p3250_p7 = pneg %p3242_p6 }
  0x23   : > { %p2849_p9 = pnand %p2847_p8, %p3250_p7 }
  0x25   : > { %p2850_p10 = pneg %p2849_p9 }
  0x27   : > { %p2857_p0 = pnand %p2856_p13, %p2850_p10 }
  0x29   : > { %2860 = shalt.err (!%p2857_p0)
}
  0x2a   : > { %s3100_s0 = smov 64   ;;  %s3101_s21 = smov 4  }
  0x2b   : > { %s3743_s4 = sld [smem:[#allocation23_spill]]  ;;  %s2872_s17 = scalar_lea.vmem %s504_s22, 16 }
  0x2c   : > { %p2873_p2 = scmp.ne.s32.totalorder %s504_s22, %s2872_s17  ;;  %s2879_s16 = scalar_lea.vmem %s504_s22, 32 }
  0x2d   : > { %p2880_p9 = scmp.lt.s32.totalorder %s504_s22, %s504_s22  ;;  %p2881_p4 = scmp.lt.s32.totalorder %s2879_s16, %s2872_s17 }
  0x2e   : > { %p2875_p5 = pnand %p2873_p2, %p3250_p7 }
  0x2f   : > { %p2882_p11 = por %p2881_p4, %p2880_p9 }
  0x30   : > { %p2876_p8 = pneg %p2875_p5 }
  0x31   : > { %2708 = dma.hbm_to_vmem [thread:$0]  (!%p3242_p6), %s3743_s4, 256, %s479_s19, [#allocation6], %s3100_s0, %s3100_s0, %s3101_s21  }
  0x32   : > { %p2883_p10 = pnand %p2882_p11, %p2876_p8 }
  0x34   : > { %2886 = shalt.err (!%p2883_p10)
}
  0x35   : > { %s3744_s6 = sld [smem:[#allocation25_spill]]  ;;  %s2898_s18 = scalar_lea.vmem %s3246_s24, 256 }
  0x36   : > { %p2899_p12 = scmp.ne.s32.totalorder %s3246_s24, %s2898_s18  ;;  %p2906_p2 = scmp.lt.s32.totalorder %s3246_s24, %s3246_s24 }
  0x37   : > { %p2907_p4 = scmp.lt.s32.totalorder %s2898_s18, %s2898_s18 }
  0x38   : > { %p2901_p13 = pnand %p2899_p12, %p3250_p7 }
  0x39   : > { %p2908_p5 = por %p2907_p4, %p2906_p2 }
  0x3a   : > { %p2902_p0 = pneg %p2901_p13 }
  0x3b   : > { %2714 = dma.hbm_to_vmem [thread:$0]  (!%p3242_p6), %s3744_s6, 16, %s504_s22, [#allocation9]  }
  0x3c   : > { %p2909_p8 = pnand %p2908_p5, %p2902_p0 }
  0x3e   : > { %2912 = shalt.err (!%p2909_p8)
}
  0x3f   : > { %s3745_s8 = sld [smem:[#allocation27_spill]]  ;;  %s3102_s17 = smov [#allocation7]  }
  0x40   : > { %s492_s19 = sshll.u32 %s3102_s17, 4  ;;  %s3103_s22 = smov [#allocation10]   ;;  %s493_s19 = int_to_ptr.vmem [resolvable:$true] %s492_s19 }
  0x41   : > { %s514_s23 = sshll.u32 %s3103_s22, 4  ;;  %s2924_s26 = scalar_lea.vmem %s493_s19, 16  ;;  %s515_s23 = int_to_ptr.vmem [resolvable:$true] %s514_s23 }
  0x42   : > { %p2925_p9 = scmp.ne.s32.totalorder %s493_s19, %s2924_s26  ;;  %s2931_s18 = scalar_lea.vmem %s493_s19, 32 }
  0x43   : > { %p2932_p12 = scmp.lt.s32.totalorder %s493_s19, %s493_s19  ;;  %p2933_p13 = scmp.lt.s32.totalorder %s2931_s18, %s2924_s26 }
  0x44   : > { %p2927_p11 = pnand %p2925_p9, %p3250_p7 }
  0x45   : > { %2720 = dma.hbm_to_vmem [thread:$0]  (!%p3242_p6), %s3745_s8, 256, %s3246_s24, [#allocation12], %s3100_s0, %s3100_s0, %s3101_s21  }
  0x46   : > { %p2928_p10 = pneg %p2927_p11  ;;  %p2934_p0 = por %p2933_p13, %p2932_p12 }
  0x48   : > { %p2935_p2 = pnand %p2934_p0, %p2928_p10 }
  0x4a   : > { %2938 = shalt.err (!%p2935_p2)
}
  0x4b   : > { %s3746_s5 = sld [smem:[#allocation24_spill]]  ;;  %s2950_s0 = scalar_lea.vmem %s515_s23, 16 }
  0x4c   : > { %p2951_p4 = scmp.ne.s32.totalorder %s515_s23, %s2950_s0  ;;  %s2957_s21 = scalar_lea.vmem %s515_s23, 32 }
  0x4d   : > { %p2958_p9 = scmp.lt.s32.totalorder %s515_s23, %s515_s23  ;;  %p2959_p11 = scmp.lt.s32.totalorder %s2957_s21, %s2950_s0 }
  0x4e   : > { %p2953_p5 = pnand %p2951_p4, %p3250_p7 }
  0x4f   : > { %p2960_p1 = por %p2959_p11, %p2958_p9 }
  0x50   : > { %p2954_p8 = pneg %p2953_p5 }
  0x51   : > { %2711 = dma.hbm_to_vmem [thread:$0]  (!%p3242_p6), %s3746_s5, 16, %s493_s19, [#allocation6]  }
  0x52   : > { %p2961_p12 = pnand %p2960_p1, %p2954_p8 }
  0x54   : > { %2964 = shalt.err (!%p2961_p12)
}
  0x55   : > { %s3747_s7 = sld [smem:[#allocation26_spill]]  ;;  %s3104_s19 = smov [#allocation13]  }
  0x56   : > { %s538_s22 = sshll.u32 %s3104_s19, 4  ;;  %s539_s22 = int_to_ptr.vmem [resolvable:$true] %s538_s22 }
  0x57   : > { %s2976_s26 = scalar_lea.vmem %s539_s22, 16  ;;  %s2983_s18 = scalar_lea.vmem %s539_s22, 32 }
  0x58   : > { %p2977_p10 = scmp.ne.s32.totalorder %s539_s22, %s2976_s26  ;;  %p2984_p2 = scmp.lt.s32.totalorder %s539_s22, %s539_s22 }
  0x59   : > { %p2985_p4 = scmp.lt.s32.totalorder %s2983_s18, %s2976_s26 }
  0x5a   : > { %p2979_p13 = pnand %p2977_p10, %p3250_p7 }
  0x5b   : > { %2717 = dma.hbm_to_vmem [thread:$0]  (!%p3242_p6), %s3747_s7, 16, %s515_s23, [#allocation9]  }
  0x5c   : > { %p2980_p0 = pneg %p2979_p13  ;;  %p2986_p1 = por %p2985_p4, %p2984_p2 }
  0x5e   : > { %p2987_p5 = pnand %p2986_p1, %p2980_p0 }
  0x60   : > { %2990 = shalt.err (!%p2987_p5)
}
  0x61   : > { %s3748_s9 = sld [smem:[#allocation28_spill]]  ;;  %s2388_s25 = sadd.s32 4294967294, %s3095_s30  }
  0x62   : > { %s3303_s2 = sadd.s32 1, %s3095_s30   ;;  %s122_s0 = sadd.s32 1, %s3091_s29 }
  0x63   : > { %s119_s23 = ssub.s32 %s3095_s30, %s3303_s2  ;;  %p129_p8 = scmp.ne.s32.totalorder %s3091_s29, %s3087_s28 }
  0x64   : > { %p120_p7 = scmp.eq.s32.totalorder %s119_s23, 0  ;;  %p130_p9 = scmp.eq.s32.totalorder %s3095_s30, 0 }
  0x65   : > { %p135_p11 = scmp.ne.s32.totalorder %s3087_s28, %s3083_s27  ;;  %p3750_p10 = scmp.eq.s32.totalorder %s3228_s1, 0 }
  0x66   : > { %s3314_s21 = scalar_select %p120_p7, %s3091_s29, %s122_s0  }
  0x67   : > { %2723 = dma.hbm_to_vmem [thread:$0]  (!%p3242_p6), %s3748_s9, 16, %s539_s22, [#allocation12]  }
  0x68   : > { %p3316_p12 = por %p130_p9, %p129_p8  ;;  %p3322_p6 = por %p3750_p10, %p135_p11 }
  0x69   : > { %p453_p13 = scmp.eq.s32.totalorder %s3228_s1, 1  ;;  %p459_p0 = scmp.eq.s32.totalorder %s2388_s25, 1 }
  0x6a   : > { %s3751_s17 = scalar_select %p3322_p6, 1, 0 }
  0x6b   : > { %p2738_p2 = scmp.lt.s32.totalorder %s3095_s30, 2  ;;  %s594_s19 = sand.u32 1, %s3091_s29  }
  0x6c   : > { %p3329_p4 = por %p453_p13, %p129_p8  ;;  %p3333_p1 = por %p459_p0, %p135_p11 }
  0x6d   : > { %s2397_s18 = sshll.u32 %s594_s19, 3  ;;  %s2398_s15 = sshll.u32 %s3095_s30, 7 }
  0x6e   : > { %s3752_s22 = scalar_select %p3329_p4, 1, 0 }
  0x6f   : > { %s3753_s26 = scalar_select %p3333_p1, 1, 0 }
  0x70   : > { %s3341_s0 = scalar_lea.hbm %s3706_s3, %s2398_s15  ;;  %s598_s25 = scalar_lea.vmem [#allocation2], %s2397_s18 }
  0x71   : > { %s605_s4 = sshll.u32 %s598_s25, 4  ;;  %p3345_p5 = pnand %p2738_p2, %p3316_p12  ;;  %s606_s4 = int_to_ptr.vmem [resolvable:$true] %s605_s4 }
  0x72   : > { %s595_s6 = scalar_lea.sflag [#allocation3], %s594_s19  ;;  %s2991_s7 = scalar_lea.hbm %s3341_s0, 128 }
  0x73   : > { %p2992_p7 = scmp.ne.s32.totalorder %s3341_s0, %s2991_s7  ;;  %p2993_p8 = pneg %p3345_p5 }
  0x74   : > { %s2996_s23 = scalar_lea.hbm %s3706_s3, 256  ;;  %p2997_p10 = scmp.lt.s32.totalorder %s3341_s0, %s3706_s3 }
  0x75   : > { %p2994_p9 = pnand %p2993_p8, %p2992_p7  ;;  %p2998_p12 = scmp.lt.s32.totalorder %s2996_s23, %s2991_s7 }
  0x77   : > { %p2995_p11 = pneg %p2994_p9  ;;  %p2999_p13 = por %p2998_p12, %p2997_p10 }
  0x79   : > { %p3000_p0 = pnand %p2999_p13, %p2995_p11 }
  0x7b   : > { %3003 = shalt.err (!%p3000_p0)
}
  0x7c   : > { %s3004_s16 = scalar_lea.vmem %s606_s4, 128  ;;  %s3105_s19 = smov [#allocation2]  }
  0x7d   : > { %p3005_p2 = scmp.ne.s32.totalorder %s606_s4, %s3004_s16  ;;  %s3009_s8 = sshll.u32 %s3105_s19, 4  ;;  %s3010_s8 = int_to_ptr.vmem [resolvable:$false] %s3009_s8 }
  0x7e   : > { %s3011_s9 = scalar_lea.vmem %s3010_s8, 256  ;;  %p3012_p7 = scmp.lt.s32.totalorder %s606_s4, %s3010_s8 }
  0x7f   : > { %p3007_p1 = pnand %p3005_p2, %p2993_p8  ;;  %p3013_p9 = scmp.lt.s32.totalorder %s3011_s9, %s3004_s16 }
  0x81   : > { %p3008_p4 = pneg %p3007_p1  ;;  %p3014_p6 = por %p3013_p9, %p3012_p7 }
  0x83   : > { %p3015_p3 = pnand %p3014_p6, %p3008_p4 }
  0x85   : > { %3018 = shalt.err (!%p3015_p3)
}
  0x86   : > { %2727 = dma.hbm_to_vmem [thread:$0]  (!%p3345_p5), %s3341_s0, 128, %s606_s4, %s595_s6  }
  0x87   : > { %p3755_p11 = scmp.ne.s32.totalorder %s3740_s20, 0 }
  0x88   : > { %s3366_s7 = sand.u32 (!%p3755_p11), 1, %s3087_s28   ;;  %p3756_p3 = scmp.ne.s32.totalorder (!%p3755_p11), %s3751_s17, 0 }
  0x89   : > { %614 = sbr.rel (%p3755_p11) target bundleno = 5608 (0x15e8), region = 92  ;;  %s2400_s15 = sshll.u32 (!%p3755_p11), %s3366_s7, 3 }
  0x8a   : > { %s617_s8 = scalar_lea.sflag (!%p3755_p11), [#allocation3], %s3366_s7  ;;  %s3372_s9 = scalar_lea.vmem (!%p3755_p11), [#allocation2], %s2400_s15 }
  0x8e   : > { %3062 = dma.done.wait (%p3756_p3), %s617_s8, 128  }
  0x8f   : > { %3064 = vsyncadd (%p3756_p3), %s617_s8, 4294967168  ;;  %p3757_p6 = scmp.eq.s32.totalorder %s3228_s1, 0 }
  0x91   : > { %3066 = dma.done.wait (%p3757_p6), [#allocation6], 272   ;;  %p3758_p4 = pmov %p3757_p6 }
  0x93   : > { %3068 = vsyncadd (%p3758_p4), [#allocation6], 4294967024  ;;  %p3759_p1 = pmov %p3758_p4 }
  0x95   : > { %3070 = dma.done.wait (%p3759_p1), [#allocation9], 32   ;;  %p3760_p5 = pmov %p3759_p1 }
  0x96   : > { %p3761_p8 = pmov %p3759_p1 }
  0x97   : > { %3072 = vsyncadd (%p3760_p5), [#allocation9], 4294967264 }
  0x98   : > { %3074 = dma.done.wait (%p3761_p8), [#allocation12], 272   ;;  %p3762_p10 = pmov %p3759_p1 }
  0x99   : > { %p709_p12 = scmp.lt.s32.totalorder %s3228_s1, 1  ;;  %v3106_v0 = vmov 0.0   ;;  %vm3107_vm0 = vmmov 0   ;;  %s3763_s17 = sld [smem:[#allocation20_spill]]  ;;  %vm730_vm1 = vcmask 64512   ;;  %vm792_vm3 = vcmask 1043456  }
  0x9a   : > { %3076 = vsyncadd (%p3762_p10), [#allocation12], 4294967024  ;;  %2513 = vmatprep.subr.bf16.mxu0 %v3106_v0  ;;  %2515 = vmatprep.mubr.msk.bf16.mxu0 %vm3107_vm0, %v3106_v0  ;;  %s3764_s18 = sld [smem:[#allocation22_spill]]  ;;  %s3108_s16 = smov 120   ;;  %v726_v25 = vld [vmem:[#allocation5] sm:$0xf] }
  0x9b   : > { %s710_s4 = scalar_select %p709_p12, %s3228_s1, 1  ;;  %2519 = vmatprep.subr.bf16.mxu1 %v3106_v0  ;;  %2521 = vmatprep.mubr.msk.bf16.mxu1 %vm3107_vm0, %v3106_v0  ;;  %v992_v26 = vsel %vm792_vm3, %v726_v25, 0  ;;  %v727_v50 = vld [vmem:[#allocation5 + $0x4] sm:$0xf]  ;;  %vm1349_vm5 = vcmask 261120   ;;  %vm2136_vm6 = vcmask 523264  }
  0x9c   : > { %s3109_s19 = smov 112   ;;  %v946_v53 = vsel %vm792_vm3, %v727_v50, 0  ;;  %s3110_s8 = smov 104  }
  0x9d   : > { %s3398_s5 = sshll.u32 %s710_s4, 3  ;;  %s3765_s20 = sld [smem:[#allocation21_spill]] }
  0x9e   : > { %s3769_s23 = sld [smem:[#allocation32_spill]]  ;;  %p3770_p0 = scmp.ne.s32.totalorder %s3752_s22, 0 }
  0x9f   : > { %s712_s0 = scalar_lea.vmem %s3763_s17, %s3398_s5 }
  0xa0   : > { %v3404_v1 = vld [vmem:[%s712_s0] sm:$0xff]  ;;  %s720_s25 = scalar_lea.vmem %s3764_s18, %s3398_s5 }
  0xa1   : > { %v3408_v2 = vpack.c.bf16 %v3404_v1, %v3404_v1  ;;  %v3421_v4 = vld [vmem:[%s720_s25] sm:$0xff]  ;;  %s3766_s25 = sld [smem:[#allocation29_spill]] }
  0xa2   : > { %vm774_vm2 = vcmp.eq.f32.partialorder %v3421_v4, 0.0 }
  0xa3   : > { %v732_v3 = vsel %vm730_vm1, %v3408_v2, 0  ;;  %837 = vrot.lane.b32.xlu1 %v3408_v2, %s3108_s16  ;;  %v793_v17 = vsel %vm792_vm3, %v3408_v2, 0  ;;  %s716_s17 = scalar_lea.vmem %s3765_s20, %s3398_s5  ;;  %s3768_s20 = sld [smem:[#allocation31_spill]] }
  0xa4   : > { %2514 = vmatpush3.bf16.xpose.msra.mxu0 %v732_v3  ;;  %2520 = vmatpush3.bf16.msra.mxu1 %v793_v17  ;;  %v723_v4 = vld [vmem:[%s716_s17] sm:$0xff]  ;;  %s2454_s17 = sshll.u32 %s3228_s1, 7 }
  0xa5   : > { %2543 = vmatprep.subr.bf16.mxu0 %v3106_v0  ;;  %2525 = vmatprep.subr.bf16.mxu1 %v3106_v0  ;;  %s2223_s18 = scalar_lea.hbm %s3769_s23, %s2454_s17 }
  0xab   : > { %2516 = vmatmul.mubr.msk.bf16.vlgmr.msra.gmra.mxu0 %vm730_vm1, %v3408_v2 }
  0xac   : > { %2545 = vmatprep.mubr.msk.bf16.mxu0 %vm3107_vm0, %v3106_v0  ;;  %2544 = vmatpush3.bf16.msra.mxu0 %v992_v26 }
  0xad   : > { %2555 = vmatprep.subr.bf16.mxu0 %v3106_v0 }
 0x115   : > { %v838_v20 = vpop.permute.xlu1 %837 }
 0x116   : > { %v840_v23 = vsel %vm730_vm1, %v838_v20, 0  ;;  %v899_v24 = vsel %vm792_vm3, %v838_v20, 0 }
 0x16b   : > { %v768_v5 = vpop.f32.mrf.mxu0 }
 0x16c   : > { %v775_v6 = vsel %vm774_vm2, -1e+20, %v768_v5 }
 0x16d   : > { %v776_v7 = vmul.f32 0.17677669, %v775_v6  ;;  %v2517_v8 = vpop.f32.mrf.mxu0 }
 0x16f   : > { %v771_v9 = vpop.f32.mrf.mxu0  ;;  %v777_v10 = vsel %vm730_vm1, %v776_v7, -inf }
 0x170   : > { %778 = vmax.xlane.f32.xlu0 %v777_v10 }
 0x171   : > { %v2518_v11 = vpop.f32.mrf.mxu0 }
 0x1f9   : > { %v779_v12 = vpop.xlane.xlu0 %778 }
 0x1fa   : > { %v780_v13 = vsub.f32 %v776_v7, %v779_v12 }
 0x1fc   : > { %v781_v14 = vmul.f32 1.442695, %v780_v13 }
 0x1fe   : > { %2797 = vpow2.f32 %v781_v14 }
 0x20b   : > { %v2798_v15 = vpop.eup %2797 }
 0x20c   : > { %v783_v16 = vsel %vm730_vm1, %v2798_v15, 0.0 }
 0x20d   : > { %784 = vadd.xlane.f32.xlu0 %v783_v16 }
 0x296   : > { %v785_v18 = vpop.xlane.xlu0 %784 }
 0x297   : > { %2799 = vrcp.f32 %v785_v18  ;;  %v728_v18 = vld [vmem:[#allocation5 + $0x8] sm:$0xf] }
 0x2a4   : > { %v2800_v19 = vpop.eup %2799 }
 0x2a5   : > { %v787_v21 = vmul.f32 %v2800_v19, %v2798_v15  ;;  %v1143_v19 = vsel %vm792_vm3, %v728_v18, 0 }
 0x2a7   : > { %v788_v22 = vpack.c.bf16 %v787_v21, %v787_v21 }
 0x2a9   : > { %2522 = vmatmul.mubr.msk.bf16.vlgmr.msra.gmra.mxu1 %vm730_vm1, %v788_v22 }
 0x2aa   : > { %2526 = vmatpush3.bf16.xpose.msra.mxu1 %v840_v23  ;;  %2527 = vmatprep.mubr.msk.bf16.mxu1 %vm3107_vm0, %v3106_v0 }
 0x2ab   : > { %2531 = vmatprep.subr.bf16.mxu1 %v3106_v0 }
 0x2b1   : > { %2528 = vmatmul.mubr.msk.bf16.vlgmr.msra.gmra.mxu1 %vm730_vm1, %v838_v20 }
 0x2b2   : > { %2532 = vmatpush3.bf16.msra.mxu1 %v899_v24  ;;  %2533 = vmatprep.mubr.msk.bf16.mxu1 %vm3107_vm0, %v3106_v0 }
 0x2b3   : > { %2537 = vmatprep.subr.bf16.mxu1 %v3106_v0 }
 0x369   : > { %v829_v27 = vpop.f32.mrf.mxu1 }
 0x36a   : > { %v835_v28 = vpack.c.bf16 %v829_v27, %v829_v27 }
 0x36b   : > { %v2523_v29 = vpop.f32.mrf.mxu1 }
 0x36c   : > { %2546 = vmatmul.mubr.msk.bf16.vlgmr.msra.gmra.mxu0 %vm730_vm1, %v835_v28 }
 0x36d   : > { %v832_v30 = vpop.f32.mrf.mxu1  ;;  %2557 = vmatprep.mubr.msk.bf16.mxu0 %vm3107_vm0, %v3106_v0 }
 0x36f   : > { %v2524_v31 = vpop.f32.mrf.mxu1 }
 0x371   : > { %v876_v32 = vpop.f32.mrf.mxu1 }
 0x372   : > { %v882_v33 = vsel %vm774_vm2, -1e+20, %v876_v32 }
 0x373   : > { %v883_v34 = vmul.f32 0.17677669, %v882_v33  ;;  %v2529_v35 = vpop.f32.mrf.mxu1 }
 0x375   : > { %v879_v36 = vpop.f32.mrf.mxu1  ;;  %v884_v37 = vsel %vm730_vm1, %v883_v34, -inf }
 0x376   : > { %885 = vmax.xlane.f32.xlu1 %v884_v37 }
 0x377   : > { %v2530_v38 = vpop.f32.mrf.mxu1 }
 0x3ff   : > { %v886_v39 = vpop.xlane.xlu1 %885 }
 0x400   : > { %v887_v40 = vsub.f32 %v883_v34, %v886_v39 }
 0x402   : > { %v888_v41 = vmul.f32 1.442695, %v887_v40 }
 0x404   : > { %2801 = vpow2.f32 %v888_v41 }
 0x411   : > { %v2802_v42 = vpop.eup %2801 }
 0x412   : > { %v890_v43 = vsel %vm730_vm1, %v2802_v42, 0.0 }
 0x413   : > { %891 = vadd.xlane.f32.xlu0 %v890_v43  ;;  %v3502_v43 = vpack.c.bf16 %v723_v4, %v723_v4  ;;  %v1380_v4 = vld [vmem:[#allocation11] sm:$0xf] }
 0x429   : > { %1034 = vrot.lane.b32.xlu0 %v3408_v2, %s3109_s19 }
 0x42c   : > { %v3452_v44 = vpop.f32.mrf.mxu0 }
 0x42e   : > { %v2547_v45 = vpop.f32.mrf.mxu0 }
 0x430   : > { %v1031_v46 = vpop.f32.mrf.mxu0 }
 0x432   : > { %v2548_v47 = vpop.f32.mrf.mxu0 }
 0x49c   : > { %v892_v48 = vpop.xlane.xlu0 %891 }
 0x49d   : > { %2803 = vrcp.f32 %v892_v48 }
 0x4a0   : > { %v1035_v54 = vpop.permute.xlu0 %1034 }
 0x4a1   : > { %v1096_v55 = vsel %vm792_vm3, %v1035_v54, 0  ;;  %v1037_v58 = vsel %vm730_vm1, %v1035_v54, 0 }
 0x4a2   : > { %2556 = vmatpush3.bf16.msra.mxu0 %v1096_v55  ;;  %v1385_v55 = vsel %vm730_vm1, %v3502_v43, 0 }
 0x4a3   : > { %2567 = vmatprep.subr.bf16.mxu0 %v3106_v0 }
 0x4aa   : > { %v2804_v49 = vpop.eup %2803 }
 0x4ab   : > { %v894_v51 = vmul.f32 %v2804_v49, %v2802_v42 }
 0x4ad   : > { %v895_v52 = vpack.c.bf16 %v894_v51, %v894_v51 }
 0x4af   : > { %2534 = vmatmul.mubr.msk.bf16.vlgmr.msra.gmra.mxu1 %vm730_vm1, %v895_v52 }
 0x4b0   : > { %2538 = vmatpush3.bf16.msra.mxu1 %v946_v53  ;;  %2539 = vmatprep.mubr.msk.bf16.mxu1 %vm3107_vm0, %v3106_v0 }
 0x4b1   : > { %2549 = vmatprep.subr.bf16.mxu1 %v3106_v0 }
 0x56f   : > { %v935_v56 = vpop.f32.mrf.mxu1 }
 0x570   : > { %v941_v57 = vpack.c.bf16 %v935_v56, %v935_v56 }
 0x571   : > { %v2535_v59 = vpop.f32.mrf.mxu1 }
 0x572   : > { %2540 = vmatmul.mubr.msk.bf16.vlgmr.msra.gmra.mxu1 %vm730_vm1, %v941_v57  ;;  %v729_v57 = vld [vmem:[#allocation5 + $0xc] sm:$0xf] }
 0x573   : > { %2550 = vmatpush3.bf16.xpose.msra.mxu1 %v1037_v58  ;;  %v938_v60 = vpop.f32.mrf.mxu1  ;;  %2551 = vmatprep.mubr.msk.bf16.mxu1 %vm3107_vm0, %v3106_v0  ;;  %v1295_v58 = vsel %vm792_vm3, %v729_v57, 0 }
 0x574   : > { %2561 = vmatprep.subr.bf16.mxu1 %v3106_v0 }
 0x575   : > { %v2536_v61 = vpop.f32.mrf.mxu1 }
 0x57a   : > { %2552 = vmatmul.mubr.msk.bf16.vlgmr.msra.gmra.mxu1 %vm730_vm1, %v1035_v54 }
 0x57b   : > { %2563 = vmatprep.mubr.msk.bf16.mxu1 %vm3107_vm0, %v3106_v0  ;;  %2562 = vmatpush3.bf16.msra.mxu1 %v1143_v19 }
 0x57c   : > { %2573 = vmatprep.subr.bf16.mxu1 %v3106_v0 }
 0x632   : > { %v3471_v62 = vpop.f32.mrf.mxu1 }
 0x633   : > { %v1029_v45 = vadd.f32 %v3452_v44, %v3471_v62  ;;  %v3533_v62 = vld [vmem:[%s3372_s9] sm:$0xff]  ;;  %s708_s9 = scalar_lea.vmem [#allocation14], %s2400_s15 }
 0x634   : > { %v2541_v63 = vpop.f32.mrf.mxu1  ;;  %vm1427_vm4 = vcmp.eq.f32.partialorder %v3533_v62, 0.0  ;;  %s2225_s5 = sshll.u32 %s708_s9, 4  ;;  %s2226_s5 = int_to_ptr.vmem [resolvable:$true] %s2225_s5 }
 0x636   : > { %v985_v3 = vpop.f32.mrf.mxu1 }
 0x638   : > { %v2542_v5 = vpop.f32.mrf.mxu1 }
 0x63a   : > { %v1073_v6 = vpop.f32.mrf.mxu1 }
 0x63b   : > { %v1079_v7 = vsel %vm774_vm2, -1e+20, %v1073_v6 }
 0x63c   : > { %v1080_v8 = vmul.f32 0.17677669, %v1079_v7  ;;  %v2553_v9 = vpop.f32.mrf.mxu1 }
 0x63e   : > { %v1076_v10 = vpop.f32.mrf.mxu1  ;;  %v1081_v11 = vsel %vm730_vm1, %v1080_v8, -inf }
 0x63f   : > { %1082 = vmax.xlane.f32.xlu0 %v1081_v11 }
 0x640   : > { %v2554_v12 = vpop.f32.mrf.mxu1 }
 0x6c8   : > { %v1083_v13 = vpop.xlane.xlu0 %1082 }
 0x6c9   : > { %v1084_v14 = vsub.f32 %v1080_v8, %v1083_v13 }
 0x6cb   : > { %v1085_v15 = vmul.f32 1.442695, %v1084_v14 }
 0x6cd   : > { %2805 = vpow2.f32 %v1085_v15 }
 0x6da   : > { %v2806_v16 = vpop.eup %2805 }
 0x6db   : > { %v1087_v17 = vsel %vm730_vm1, %v2806_v16, 0.0 }
 0x6dc   : > { %1088 = vadd.xlane.f32.xlu1 %v1087_v17 }
 0x6ed   : > { %1186 = vrot.lane.b32.xlu1 %v3408_v2, %s3110_s8 }
 0x765   : > { %v1089_v20 = vpop.xlane.xlu1 %1088 }
 0x766   : > { %2807 = vrcp.f32 %v1089_v20 }
 0x769   : > { %v1187_v22 = vpop.permute.xlu1 %1186 }
 0x76a   : > { %v1189_v25 = vsel %vm730_vm1, %v1187_v22, 0  ;;  %v1248_v28 = vsel %vm792_vm3, %v1187_v22, 0 }
 0x773   : > { %v2808_v21 = vpop.eup %2807 }
 0x774   : > { %v1091_v23 = vmul.f32 %v2808_v21, %v2806_v16 }
 0x776   : > { %v1092_v24 = vpack.c.bf16 %v1091_v23, %v1091_v23 }
 0x778   : > { %2558 = vmatmul.mubr.msk.bf16.vlgmr.msra.gmra.mxu0 %vm730_vm1, %v1092_v24 }
 0x779   : > { %2568 = vmatpush3.bf16.xpose.msra.mxu0 %v1189_v25  ;;  %2569 = vmatprep.mubr.msk.bf16.mxu0 %vm3107_vm0, %v3106_v0 }
 0x77a   : > { %2579 = vmatprep.subr.bf16.mxu0 %v3106_v0 }
 0x780   : > { %2570 = vmatmul.mubr.msk.bf16.vlgmr.msra.gmra.mxu0 %vm730_vm1, %v1187_v22 }
 0x781   : > { %2581 = vmatprep.mubr.msk.bf16.mxu0 %vm3107_vm0, %v3106_v0  ;;  %2580 = vmatpush3.bf16.msra.mxu0 %v1295_v58 }
 0x782   : > { %2591 = vmatprep.subr.bf16.mxu0 %v3106_v0 }
 0x838   : > { %v1132_v2 = vpop.f32.mrf.mxu0 }
 0x839   : > { %v1138_v26 = vpack.c.bf16 %v1132_v2, %v1132_v2 }
 0x83a   : > { %v2559_v27 = vpop.f32.mrf.mxu0 }
 0x83b   : > { %2564 = vmatmul.mubr.msk.bf16.vlgmr.msra.gmra.mxu1 %vm730_vm1, %v1138_v26 }
 0x83c   : > { %2574 = vmatpush3.bf16.msra.mxu1 %v1248_v28  ;;  %v1135_v29 = vpop.f32.mrf.mxu0  ;;  %2575 = vmatprep.mubr.msk.bf16.mxu1 %vm3107_vm0, %v3106_v0  ;;  %v1445_v28 = vsel %vm792_vm3, %v3502_v43, 0 }
 0x83d   : > { %2585 = vmatprep.subr.bf16.mxu1 %v3106_v0 }
 0x83e   : > { %v2560_v30 = vpop.f32.mrf.mxu0 }
 0x840   : > { %v1225_v31 = vpop.f32.mrf.mxu0 }
 0x841   : > { %v1231_v32 = vsel %vm774_vm2, -1e+20, %v1225_v31 }
 0x842   : > { %v1232_v33 = vmul.f32 0.17677669, %v1231_v32  ;;  %v2571_v34 = vpop.f32.mrf.mxu0 }
 0x844   : > { %v1228_v35 = vpop.f32.mrf.mxu0  ;;  %v1233_v36 = vsel %vm730_vm1, %v1232_v33, -inf }
 0x845   : > { %1234 = vmax.xlane.f32.xlu1 %v1233_v36 }
 0x846   : > { %v2572_v37 = vpop.f32.mrf.mxu0 }
 0x8ce   : > { %v1235_v38 = vpop.xlane.xlu1 %1234 }
 0x8cf   : > { %v1236_v39 = vsub.f32 %v1232_v33, %v1235_v38 }
 0x8d1   : > { %v1237_v40 = vmul.f32 1.442695, %v1236_v39 }
 0x8d3   : > { %2809 = vpow2.f32 %v1237_v40 }
 0x8e0   : > { %v2810_v41 = vpop.eup %2809 }
 0x8e1   : > { %v1239_v42 = vsel %vm730_vm1, %v2810_v41, 0.0 }
 0x8e2   : > { %1240 = vadd.xlane.f32.xlu0 %v1239_v42 }
 0x8f8   : > { %1489 = vrot.lane.b32.xlu0 %v3502_v43, %s3108_s16  ;;  %s3019_s16 = scalar_lea.vmem %s2226_s5, 128 }
 0x8f9   : > { %p3020_p13 = scmp.ne.s32.totalorder %s2226_s5, %s3019_s16 }
 0x8fb   : > { %v1179_v46 = vpop.f32.mrf.mxu1  ;;  %p3021_p2 = pnand %p3020_p13, %p3770_p0 }
 0x8fc   : > { %v3508_v47 = vadd.f32 %v1179_v46, %v1029_v45  ;;  %v1381_v45 = vld [vmem:[#allocation11 + $0x4] sm:$0xf] }
 0x8fd   : > { %v2565_v48 = vpop.f32.mrf.mxu1  ;;  %v1598_v46 = vsel %vm792_vm3, %v1381_v45, 0  ;;  %p3022_p7 = pneg %p3021_p2 }
 0x8ff   : > { %v1182_v49 = vpop.f32.mrf.mxu1 }
 0x901   : > { %v2566_v50 = vpop.f32.mrf.mxu1 }
 0x96b   : > { %v1241_v51 = vpop.xlane.xlu0 %1240 }
 0x96c   : > { %2811 = vrcp.f32 %v1241_v51 }
 0x96f   : > { %v3516_v44 = vpop.permute.xlu0 %1489 }
 0x970   : > { %v1492_v56 = vsel %vm730_vm1, %v3516_v44, 0  ;;  %v1551_v39 = vsel %vm792_vm3, %v3516_v44, 0 }
 0x979   : > { %v2812_v52 = vpop.eup %2811 }
 0x97a   : > { %v1243_v53 = vmul.f32 %v2812_v52, %v2810_v41 }
 0x97c   : > { %v1244_v54 = vpack.c.bf16 %v1243_v53, %v1243_v53 }
 0x97e   : > { %2576 = vmatmul.mubr.msk.bf16.vlgmr.msra.gmra.mxu1 %vm730_vm1, %v1244_v54 }
 0x97f   : > { %2586 = vmatpush3.bf16.xpose.msra.mxu1 %v1385_v55  ;;  %2587 = vmatprep.mubr.msk.bf16.mxu1 %vm3107_vm0, %v3106_v0 }
 0x980   : > { %2597 = vmatprep.subr.bf16.mxu1 %v3106_v0 }
 0x986   : > { %2588 = vmatmul.mubr.msk.bf16.vlgmr.msra.gmra.mxu1 %vm730_vm1, %v3502_v43 }
 0x987   : > { %2598 = vmatpush3.bf16.xpose.msra.mxu1 %v1492_v56  ;;  %2599 = vmatprep.mubr.msk.bf16.mxu1 %vm3107_vm0, %v3106_v0 }
 0x988   : > { %2609 = vmatprep.subr.bf16.mxu1 %v3106_v0 }
 0x98e   : > { %2600 = vmatmul.mubr.msk.bf16.vlgmr.msra.gmra.mxu1 %vm730_vm1, %v3516_v44 }
 0x98f   : > { %2611 = vmatprep.mubr.msk.bf16.mxu1 %vm3107_vm0, %v3106_v0  ;;  %2610 = vmatpush3.bf16.msra.mxu1 %v1598_v46 }
 0x990   : > { %2621 = vmatprep.subr.bf16.mxu1 %v3106_v0 }
 0xa3e   : > { %v1284_v59 = vpop.f32.mrf.mxu1 }
 0xa3f   : > { %v1290_v60 = vpack.c.bf16 %v1284_v59, %v1284_v59 }
 0xa40   : > { %v2577_v61 = vpop.f32.mrf.mxu1 }
 0xa41   : > { %2582 = vmatmul.mubr.msk.bf16.vlgmr.msra.gmra.mxu0 %vm730_vm1, %v1290_v60 }
 0xa42   : > { %v1287_v63 = vpop.f32.mrf.mxu1  ;;  %2593 = vmatprep.mubr.msk.bf16.mxu0 %vm3107_vm0, %v3106_v0  ;;  %2592 = vmatpush3.bf16.msra.mxu0 %v1445_v28 }
 0xa43   : > { %2603 = vmatprep.subr.bf16.mxu0 %v3106_v0 }
 0xa44   : > { %v2578_v3 = vpop.f32.mrf.mxu1 }
 0xa46   : > { %v1421_v5 = vpop.f32.mrf.mxu1 }
 0xa47   : > { %v1428_v6 = vsel %vm1427_vm4, -1e+20, %v1421_v5 }
 0xa48   : > { %v1429_v7 = vmul.f32 0.17677669, %v1428_v6  ;;  %v2589_v8 = vpop.f32.mrf.mxu1 }
 0xa4a   : > { %v1424_v9 = vpop.f32.mrf.mxu1  ;;  %v1430_v10 = vsel %vm730_vm1, %v1429_v7, -inf }
 0xa4b   : > { %1431 = vmax.xlane.f32.xlu0 %v1430_v10 }
 0xa4c   : > { %v2590_v11 = vpop.f32.mrf.mxu1 }
 0xa4e   : > { %v1528_v12 = vpop.f32.mrf.mxu1 }
 0xa4f   : > { %v1534_v13 = vsel %vm1427_vm4, -1e+20, %v1528_v12 }
 0xa50   : > { %v1535_v14 = vmul.f32 0.17677669, %v1534_v13  ;;  %v2601_v15 = vpop.f32.mrf.mxu1 }
 0xa52   : > { %v1531_v16 = vpop.f32.mrf.mxu1  ;;  %v1536_v17 = vsel %vm730_vm1, %v1535_v14, -inf }
 0xa53   : > { %1537 = vmax.xlane.f32.xlu1 %v1536_v17 }
 0xa54   : > { %v2602_v18 = vpop.f32.mrf.mxu1 }
 0xad4   : > { %v1432_v19 = vpop.xlane.xlu0 %1431 }
 0xad5   : > { %v1433_v20 = vsub.f32 %v1429_v7, %v1432_v19 }
 0xad7   : > { %v1434_v21 = vmul.f32 1.442695, %v1433_v20 }
 0xad9   : > { %2813 = vpow2.f32 %v1434_v21  ;;  %v1382_v21 = vld [vmem:[#allocation11 + $0x8] sm:$0xf] }
 0xadc   : > { %v1538_v22 = vpop.xlane.xlu1 %1537 }
 0xadd   : > { %v1539_v23 = vsub.f32 %v1535_v14, %v1538_v22  ;;  %v1795_v22 = vsel %vm792_vm3, %v1382_v21, 0 }
 0xadf   : > { %v1540_v24 = vmul.f32 1.442695, %v1539_v23 }
 0xae1   : > { %2815 = vpow2.f32 %v1540_v24 }
 0xae6   : > { %v2814_v25 = vpop.eup %2813 }
 0xae7   : > { %v1436_v2 = vsel %vm730_vm1, %v2814_v25, 0.0 }
 0xae8   : > { %1437 = vadd.xlane.f32.xlu1 %v1436_v2 }
 0xaee   : > { %v2816_v26 = vpop.eup %2815 }
 0xaef   : > { %v1542_v27 = vsel %vm730_vm1, %v2816_v26, 0.0 }
 0xaf0   : > { %1543 = vadd.xlane.f32.xlu1 %v1542_v27 }
 0xb01   : > { %v1331_v29 = vpop.f32.mrf.mxu0  ;;  %1686 = vrot.lane.b32.xlu1 %v3502_v43, %s3109_s19  ;;  %s3111_s19 = smov [#allocation14]  }
 0xb02   : > { %v3552_v30 = vadd.f32 %v1331_v29, %v3508_v47  ;;  %s3023_s1 = sshll.u32 %s3111_s19, 4  ;;  %s3024_s1 = int_to_ptr.vmem [resolvable:$false] %s3023_s1 }
 0xb03   : > { %v2583_v31 = vpop.f32.mrf.mxu0  ;;  %s3025_s15 = scalar_lea.vmem %s3024_s1, 256  ;;  %p3026_p9 = scmp.lt.s32.totalorder %s2226_s5, %s3024_s1 }
 0xb04   : > { %p3027_p11 = scmp.lt.s32.totalorder %s3025_s15, %s3019_s16 }
 0xb05   : > { %v1334_v32 = vpop.f32.mrf.mxu0  ;;  %1838 = vrot.lane.b32.xlu1 %v3502_v43, %s3110_s8  ;;  %v1644_v43 = vsel %vm792_vm3, %v1380_v4, 0  ;;  %s3767_s8 = sld [smem:[#allocation30_spill]] }
 0xb06   : > { %p3028_p3 = por %p3027_p11, %p3026_p9 }
 0xb07   : > { %v2584_v33 = vpop.f32.mrf.mxu0 }
 0xb08   : > { %p3029_p6 = pnand %p3028_p3, %p3022_p7 }
 0xb71   : > { %v1438_v34 = vpop.xlane.xlu1 %1437 }
 0xb72   : > { %2817 = vrcp.f32 %v1438_v34  ;;  %v2423_v34 = vld [vmem:[#allocation7] ss:$0 sm:$0xff] }
 0xb79   : > { %v1544_v35 = vpop.xlane.xlu1 %1543 }
 0xb7a   : > { %2819 = vrcp.f32 %v1544_v35 }
 0xb7d   : > { %v1687_v47 = vpop.permute.xlu1 %1686 }
 0xb7e   : > { %v1748_v50 = vsel %vm792_vm3, %v1687_v47, 0  ;;  %v1689_v44 = vsel %vm730_vm1, %v1687_v47, 0 }
 0xb7f   : > { %v2818_v36 = vpop.eup %2817 }
 0xb80   : > { %v1440_v37 = vmul.f32 %v2818_v36, %v2814_v25  ;;  %v1345_v36 = vadd.f32 %v2423_v34, %v3552_v30  ;;  %v2793_v34 = vld [vmem:[%s3717_s14 + $0x18] sm:$0xff]  }
 0xb81   : > { %v1839_v25 = vpop.permute.xlu1 %1838 }
 0xb82   : > { %v1441_v38 = vpack.c.bf16 %v1440_v37, %v1440_v37  ;;  %v1841_v27 = vsel %vm730_vm1, %v1839_v25, 0  ;;  %v1900_v32 = vsel %vm792_vm3, %v1839_v25, 0  ;;  %v1346_v4 = vadd.f32 %v1345_v36, %v3404_v1 }
 0xb84   : > { %2594 = vmatmul.mubr.msk.bf16.vlgmr.msra.gmra.mxu0 %vm730_vm1, %v1441_v38  ;;  %v1350_v45 = vsel %vm1349_vm5, %v1346_v4, 0.0 }
 0xb85   : > { %2604 = vmatpush3.bf16.msra.mxu0 %v1551_v39  ;;  %2605 = vmatprep.mubr.msk.bf16.mxu0 %vm3107_vm0, %v3106_v0 }
 0xb86   : > { %2615 = vmatprep.subr.bf16.mxu0 %v3106_v0 }
 0xb87   : > { %v2820_v40 = vpop.eup %2819 }
 0xb88   : > { %v1546_v41 = vmul.f32 %v2820_v40, %v2816_v26 }
 0xb8a   : > { %v1547_v42 = vpack.c.bf16 %v1546_v41, %v1546_v41 }
 0xb8c   : > { %2606 = vmatmul.mubr.msk.bf16.vlgmr.msra.gmra.mxu0 %vm730_vm1, %v1547_v42 }
 0xb8d   : > { %2617 = vmatprep.mubr.msk.bf16.mxu0 %vm3107_vm0, %v3106_v0  ;;  %2616 = vmatpush3.bf16.msra.mxu0 %v1644_v43 }
 0xb8e   : > { %2627 = vmatprep.subr.bf16.mxu0 %v3106_v0 }
 0xc44   : > { %v1481_v48 = vpop.f32.mrf.mxu0 }
 0xc45   : > { %v1487_v49 = vpack.c.bf16 %v1481_v48, %v1481_v48 }
 0xc46   : > { %v2595_v51 = vpop.f32.mrf.mxu0 }
 0xc47   : > { %2618 = vmatmul.mubr.msk.bf16.vlgmr.msra.gmra.mxu0 %vm730_vm1, %v1487_v49 }
 0xc48   : > { %v1484_v52 = vpop.f32.mrf.mxu0  ;;  %2628 = vmatpush3.bf16.msra.mxu0 %v1748_v50  ;;  %2629 = vmatprep.mubr.msk.bf16.mxu0 %vm3107_vm0, %v3106_v0 }
 0xc49   : > { %2639 = vmatprep.subr.bf16.mxu0 %v3106_v0 }
 0xc4a   : > { %v2596_v53 = vpop.f32.mrf.mxu0 }
 0xc4c   : > { %v1587_v54 = vpop.f32.mrf.mxu0 }
 0xc4d   : > { %v1593_v55 = vpack.c.bf16 %v1587_v54, %v1587_v54 }
 0xc4e   : > { %v2607_v56 = vpop.f32.mrf.mxu0 }
 0xc4f   : > { %2612 = vmatmul.mubr.msk.bf16.vlgmr.msra.gmra.mxu1 %vm730_vm1, %v1593_v55 }
 0xc50   : > { %2622 = vmatpush3.bf16.xpose.msra.mxu1 %v1689_v44  ;;  %v1590_v57 = vpop.f32.mrf.mxu0  ;;  %2623 = vmatprep.mubr.msk.bf16.mxu1 %vm3107_vm0, %v3106_v0  ;;  %v1383_v44 = vld [vmem:[#allocation11 + $0xc] sm:$0xf] }
 0xc51   : > { %2633 = vmatprep.subr.bf16.mxu1 %v3106_v0  ;;  %v1947_v57 = vsel %vm792_vm3, %v1383_v44, 0 }
 0xc52   : > { %v2608_v58 = vpop.f32.mrf.mxu0 }
 0xc57   : > { %2624 = vmatmul.mubr.msk.bf16.vlgmr.msra.gmra.mxu1 %vm730_vm1, %v1687_v47 }
 0xc58   : > { %2635 = vmatprep.mubr.msk.bf16.mxu1 %vm3107_vm0, %v3106_v0  ;;  %2634 = vmatpush3.bf16.msra.mxu1 %v1795_v22 }
 0xc59   : > { %2645 = vmatprep.subr.bf16.mxu1 %v3106_v0 }
 0xd07   : > { %v1680_v59 = vpop.f32.mrf.mxu0 }
 0xd09   : > { %v2619_v60 = vpop.f32.mrf.mxu0 }
 0xd0b   : > { %v1683_v61 = vpop.f32.mrf.mxu0 }
 0xd0d   : > { %v2620_v63 = vpop.f32.mrf.mxu0 }
 0xd0f   : > { %v1634_v3 = vpop.f32.mrf.mxu1 }
 0xd10   : > { %v3582_v5 = vadd.f32 %v1680_v59, %v1634_v3 }
 0xd11   : > { %v2613_v6 = vpop.f32.mrf.mxu1 }
 0xd13   : > { %v1637_v7 = vpop.f32.mrf.mxu1 }
 0xd15   : > { %v2614_v8 = vpop.f32.mrf.mxu1 }
 0xd17   : > { %v1725_v9 = vpop.f32.mrf.mxu1 }
 0xd18   : > { %v1731_v10 = vsel %vm1427_vm4, -1e+20, %v1725_v9 }
 0xd19   : > { %v1732_v11 = vmul.f32 0.17677669, %v1731_v10  ;;  %v2625_v12 = vpop.f32.mrf.mxu1 }
 0xd1b   : > { %v1728_v13 = vpop.f32.mrf.mxu1  ;;  %v1733_v14 = vsel %vm730_vm1, %v1732_v11, -inf }
 0xd1c   : > { %1734 = vmax.xlane.f32.xlu0 %v1733_v14  ;;  %v2424_v14 = vld [vmem:[#allocation8] ss:$0 sm:$0xff] }
 0xd1d   : > { %v2626_v15 = vpop.f32.mrf.mxu1 }
 0xda5   : > { %v1735_v16 = vpop.xlane.xlu0 %1734 }
 0xda6   : > { %v1736_v17 = vsub.f32 %v1732_v11, %v1735_v16 }
 0xda8   : > { %v1737_v18 = vmul.f32 1.442695, %v1736_v17  ;;  %v2438_v17 = vld [vmem:[#allocation13] ss:$0 sm:$0xff] }
 0xdaa   : > { %2821 = vpow2.f32 %v1737_v18  ;;  %v2425_v18 = vld [vmem:[#allocation10] ss:$0 sm:$0xff] }
 0xdb7   : > { %v2822_v19 = vpop.eup %2821 }
 0xdb8   : > { %v1739_v20 = vsel %vm730_vm1, %v2822_v19, 0.0 }
 0xdb9   : > { %1740 = vadd.xlane.f32.xlu0 %v1739_v20 }
 0xe42   : > { %v1741_v23 = vpop.xlane.xlu0 %1740 }
 0xe43   : > { %2823 = vrcp.f32 %v1741_v23 }
 0xe50   : > { %v2824_v24 = vpop.eup %2823 }
 0xe51   : > { %v1743_v2 = vmul.f32 %v2824_v24, %v2822_v19 }
 0xe53   : > { %v1744_v26 = vpack.c.bf16 %v1743_v2, %v1743_v2 }
 0xe55   : > { %2630 = vmatmul.mubr.msk.bf16.vlgmr.msra.gmra.mxu0 %vm730_vm1, %v1744_v26 }
 0xe56   : > { %2640 = vmatpush3.bf16.xpose.msra.mxu0 %v1841_v27  ;;  %2641 = vmatprep.mubr.msk.bf16.mxu0 %vm3107_vm0, %v3106_v0 }
 0xe57   : > { %2651 = vmatprep.subr.bf16.mxu0 %v3106_v0 }
 0xe5d   : > { %2642 = vmatmul.mubr.msk.bf16.vlgmr.msra.gmra.mxu0 %vm730_vm1, %v1839_v25 }
 0xe5e   : > { %2653 = vmatprep.mubr.msk.bf16.mxu0 %vm3107_vm0, %v3106_v0  ;;  %2652 = vmatpush3.bf16.msra.mxu0 %v1947_v57 }
 0xe5f   : > { %2665 = vmatprep.subr.bf16.mxu0 %v3106_v0 }
 0xf15   : > { %v1784_v28 = vpop.f32.mrf.mxu0 }
 0xf16   : > { %v1790_v29 = vpack.c.bf16 %v1784_v28, %v1784_v28 }
 0xf17   : > { %v2631_v31 = vpop.f32.mrf.mxu0 }
 0xf18   : > { %2636 = vmatmul.mubr.msk.bf16.vlgmr.msra.gmra.mxu1 %vm730_vm1, %v1790_v29 }
 0xf19   : > { %2646 = vmatpush3.bf16.msra.mxu1 %v1900_v32  ;;  %v1787_v33 = vpop.f32.mrf.mxu0  ;;  %2647 = vmatprep.mubr.msk.bf16.mxu1 %vm3107_vm0, %v3106_v0  ;;  %v2791_v32 = vld [vmem:[%s3715_s12 + $0x8] sm:$0xff]  }
 0xf1a   : > { %2657 = vmatprep.subr.bf16.mxu1 %v3106_v0  ;;  %v2792_v33 = vld [vmem:[%s3715_s12] sm:$0xff]  }
 0xf1b   : > { %v2632_v35 = vpop.f32.mrf.mxu0 }
 0xf1c   : > { %v2794_v35 = vld [vmem:[%s3717_s14 + $0x10] sm:$0xff]  }
 0xf1d   : > { %v1877_v37 = vpop.f32.mrf.mxu0 }
 0xf1e   : > { %v1883_v38 = vsel %vm1427_vm4, -1e+20, %v1877_v37 }
 0xf1f   : > { %v1884_v39 = vmul.f32 0.17677669, %v1883_v38  ;;  %v2643_v40 = vpop.f32.mrf.mxu0 }
 0xf20   : > { %v2439_v40 = vld [vmem:[%s3713_s10] ss:$0 sm:$0xff] }
 0xf21   : > { %v1880_v41 = vpop.f32.mrf.mxu0  ;;  %v1885_v42 = vsel %vm730_vm1, %v1884_v39, -inf }
 0xf22   : > { %1886 = vmax.xlane.f32.xlu0 %v1885_v42  ;;  %v2440_v42 = vld [vmem:[%s3714_s11] ss:$0 sm:$0xff] }
 0xf23   : > { %v2644_v43 = vpop.f32.mrf.mxu0 }
 0xf26   : > { %1351 = vadd.xlane.f32.xlu0 %v1350_v45 }
 0xfab   : > { %v1887_v46 = vpop.xlane.xlu0 %1886 }
 0xfac   : > { %v1888_v47 = vsub.f32 %v1884_v39, %v1887_v46  ;;  %v2795_v46 = vld [vmem:[%s3717_s14 + $0x8] sm:$0xff]  }
 0xfae   : > { %v1889_v30 = vmul.f32 1.442695, %v1888_v47  ;;  %v2796_v47 = vld [vmem:[%s3717_s14] sm:$0xff]  }
 0xfaf   : > { %v1352_v48 = vpop.xlane.xlu0 %1351 }
 0xfb0   : > { %2825 = vpow2.f32 %v1889_v30  ;;  %v1354_v62 = vmul.f32 0.03125, %v1352_v48  ;;  %v2441_v30 = vld [vmem:[%s3716_s13] ss:$0 sm:$0xff] }
 0xfb2   : > { %v1355_v49 = vsub.f32 %v1346_v4, %v1354_v62 }
 0xfb4   : > { %v1356_v50 = vmul.f32 %v1355_v49, %v1355_v49 }
 0xfb6   : > { %v1357_v51 = vsel %vm1349_vm5, %v1356_v50, 0.0 }
 0xfb7   : > { %1358 = vadd.xlane.f32.xlu0 %v1357_v51 }
 0xfbd   : > { %v2826_v52 = vpop.eup %2825 }
 0xfbe   : > { %v1891_v1 = vsel %vm730_vm1, %v2826_v52, 0.0 }
 0xfbf   : > { %1892 = vadd.xlane.f32.xlu1 %v1891_v1 }
 0xfd8   : > { %v1831_v53 = vpop.f32.mrf.mxu1 }
 0xfd9   : > { %v1837_v54 = vadd.f32 %v1831_v53, %v3582_v5 }
 0xfda   : > { %v2637_v55 = vpop.f32.mrf.mxu1 }
 0xfdc   : > { %v1834_v56 = vpop.f32.mrf.mxu1 }
 0xfde   : > { %v2638_v58 = vpop.f32.mrf.mxu1 }
0x1040   : > { %v1359_v9 = vpop.xlane.xlu0 %1358 }
0x1041   : > { %v1360_v10 = vmul.f32 0.03125, %v1359_v9  ;;  %v2451_v9 = vld [vmem:[%s3767_s8] ss:$0 sm:$0xff] }
0x1043   : > { %v1361_v11 = vadd.f32 1e-05, %v1360_v10 }
0x1048   : > { %v1893_v59 = vpop.xlane.xlu1 %1892 }
0x1049   : > { %2827 = vrcp.f32 %v1893_v59 }
0x104a   : > { %2829 = vrsqrt.f32 %v1361_v11  ;;  %v2452_v11 = vld [vmem:[%s3768_s20] ss:$0 sm:$0xff] }
0x1056   : > { %v2828_v60 = vpop.eup %2827 }
0x1057   : > { %v1895_v61 = vmul.f32 %v2828_v60, %v2826_v52  ;;  %v2830_v12 = vpop.eup %2829 }
0x1058   : > { %v1363_v13 = vmul.f32 %v2830_v12, %v1355_v49 }
0x1059   : > { %v1896_v63 = vpack.c.bf16 %v1895_v61, %v1895_v61 }
0x105a   : > { %v1370_v15 = vmul.f32 %v2424_v14, %v1363_v13 }
0x105b   : > { %2648 = vmatmul.mubr.msk.bf16.vlgmr.msra.gmra.mxu1 %vm730_vm1, %v1896_v63 }
0x105c   : > { %2661 = vmatprep.mubr.msk.bf16.mxu1 %vm3107_vm0, %v3106_v0  ;;  %v1377_v22 = vadd.f32 %v2425_v18, %v1370_v15  ;;  %2658 = vmatpush3.bf16.msra.mxu1 %v2791_v32 }
0x105d   : > { %2659 = vmatprep.subr.bf16.mxu1 %v3106_v0 }
0x1060   : > { %2660 = vmatpush3.bf16.msra.mxu1 %v2792_v33 }
0x111b   : > { %v1936_v3 = vpop.f32.mrf.mxu1 }
0x111c   : > { %v1942_v5 = vpack.c.bf16 %v1936_v3, %v1936_v3 }
0x111d   : > { %v2649_v6 = vpop.f32.mrf.mxu1 }
0x111e   : > { %2654 = vmatmul.mubr.msk.bf16.vlgmr.msra.gmra.mxu0 %vm730_vm1, %v1942_v5 }
0x111f   : > { %v1939_v7 = vpop.f32.mrf.mxu1  ;;  %2673 = vmatprep.mubr.msk.bf16.mxu0 %vm3107_vm0, %v3106_v0  ;;  %2666 = vmatpush3.bf16.msra.mxu0 %v2793_v34 }
0x1120   : > { %2667 = vmatprep.subr.bf16.mxu0 %v3106_v0 }
0x1121   : > { %v2650_v8 = vpop.f32.mrf.mxu1 }
0x1123   : > { %2668 = vmatpush3.bf16.msra.mxu0 %v2794_v35 }
0x1124   : > { %2669 = vmatprep.subr.bf16.mxu0 %v3106_v0 }
0x1127   : > { %2670 = vmatpush3.bf16.msra.mxu0 %v2795_v46 }
0x1128   : > { %2671 = vmatprep.subr.bf16.mxu0 %v3106_v0  ;;  %v2445_v0 = vld [vmem:[%s3766_s25] ss:$0 sm:$0xff]  ;;  %s2212_s25 = scalar_lea.sflag [#allocation4], %s3366_s7 }
0x112b   : > { %2672 = vmatpush3.bf16.msra.mxu0 %v2796_v47 }
0x11de   : > { %v1983_v16 = vpop.f32.mrf.mxu0 }
0x11df   : > { %v1989_v19 = vadd.f32 %v1983_v16, %v1837_v54 }
0x11e0   : > { %v2655_v20 = vpop.f32.mrf.mxu0 }
0x11e1   : > { %v1997_v21 = vadd.f32 %v2438_v17, %v1989_v19 }
0x11e2   : > { %v1986_v23 = vpop.f32.mrf.mxu0 }
0x11e3   : > { %v1998_v24 = vadd.f32 %v1997_v21, %v1377_v22 }
0x11e4   : > { %v2656_v25 = vpop.f32.mrf.mxu0 }
0x11e5   : > { %v2001_v2 = vsel %vm1349_vm5, %v1998_v24, 0.0 }
0x11e6   : > { %2002 = vadd.xlane.f32.xlu0 %v2001_v2 }
0x126f   : > { %v2003_v26 = vpop.xlane.xlu0 %2002 }
0x1270   : > { %v2004_v27 = vmul.f32 0.03125, %v2003_v26 }
0x1272   : > { %v2005_v28 = vsub.f32 %v1998_v24, %v2004_v27 }
0x1274   : > { %v2006_v29 = vmul.f32 %v2005_v28, %v2005_v28 }
0x1276   : > { %v2007_v31 = vsel %vm1349_vm5, %v2006_v29, 0.0 }
0x1277   : > { %2008 = vadd.xlane.f32.xlu0 %v2007_v31 }
0x1300   : > { %v2009_v36 = vpop.xlane.xlu0 %2008 }
0x1301   : > { %v2010_v37 = vmul.f32 0.03125, %v2009_v36 }
0x1303   : > { %v2011_v38 = vadd.f32 1e-05, %v2010_v37 }
0x1305   : > { %2831 = vrsqrt.f32 %v2011_v38 }
0x1312   : > { %v2832_v39 = vpop.eup %2831 }
0x1313   : > { %v2013_v41 = vmul.f32 %v2832_v39, %v2005_v28 }
0x1315   : > { %v2020_v4 = vmul.f32 %v2439_v40, %v2013_v41 }
0x1317   : > { %v2027_v43 = vadd.f32 %v2440_v42, %v2020_v4 }
0x1319   : > { %v2028_v45 = vpack.c.bf16 %v2027_v43, %v2027_v43 }
0x131b   : > { %2662 = vmatmul.mubr.msk.bf16.vlgmr.msra.gmra.mxu1 %vm1349_vm5, %v2028_v45 }
0x13db   : > { %v2089_v48 = vpop.f32.mrf.mxu1 }
0x13dc   : > { %v2090_v62 = vadd.f32 %v2441_v30, %v2089_v48 }
0x13dd   : > { %v2663_v49 = vpop.f32.mrf.mxu1 }
0x13de   : > { %v2095_v50 = vmax.f32 %v2090_v62, 0.0 }
0x13df   : > { %v2092_v51 = vpop.f32.mrf.mxu1 }
0x13e0   : > { %v2096_v52 = vpack.c.bf16 %v2095_v50, %v2095_v50 }
0x13e1   : > { %v2664_v1 = vpop.f32.mrf.mxu1 }
0x13e2   : > { %2674 = vmatmul.mubr.msk.bf16.vlgmr.msra.gmra.mxu0 %vm2136_vm6, %v2096_v52 }
0x14a2   : > { %v2174_v53 = vpop.f32.mrf.mxu0 }
0x14a3   : > { %v2175_v54 = vadd.f32 %v2445_v0, %v2174_v53 }
0x14a4   : > { %v2675_v55 = vpop.f32.mrf.mxu0 }
0x14a5   : > { %v2180_v44 = vadd.f32 %v2175_v54, %v2027_v43 }
0x14a6   : > { %v2177_v56 = vpop.f32.mrf.mxu0 }
0x14a7   : > { %v2183_v57 = vsel %vm1349_vm5, %v2180_v44, 0.0 }
0x14a8   : > { %2184 = vadd.xlane.f32.xlu0 %v2183_v57  ;;  %v2676_v58 = vpop.f32.mrf.mxu0 }
0x1531   : > { %v2185_v59 = vpop.xlane.xlu0 %2184 }
0x1532   : > { %v2186_v60 = vmul.f32 0.03125, %v2185_v59 }
0x1534   : > { %v2187_v61 = vsub.f32 %v2180_v44, %v2186_v60 }
0x1536   : > { %v2188_v63 = vmul.f32 %v2187_v61, %v2187_v61 }
0x1538   : > { %v2189_v3 = vsel %vm1349_vm5, %v2188_v63, 0.0 }
0x1539   : > { %2190 = vadd.xlane.f32.xlu0 %v2189_v3 }
0x15c2   : > { %v2191_v5 = vpop.xlane.xlu0 %2190 }
0x15c3   : > { %v2192_v6 = vmul.f32 0.03125, %v2191_v5 }
0x15c5   : > { %v2193_v7 = vadd.f32 1e-05, %v2192_v6 }
0x15c7   : > { %2833 = vrsqrt.f32 %v2193_v7 }
0x15d4   : > { %v2834_v8 = vpop.eup %2833 }
0x15d5   : > { %v2195_v10 = vmul.f32 %v2834_v8, %v2187_v61 }
0x15d7   : > { %v2202_v12 = vmul.f32 %v2451_v9, %v2195_v10 }
0x15d9   : > { %v2209_v13 = vadd.f32 %v2452_v11, %v2202_v12 }
0x15db   : > { %2210 = vst.msk [vmem:[%s708_s9] sm:$0xff] %vm1349_vm5, %v2209_v13 }
0x15dc   : > { %3032 = shalt.err (!%p3029_p6)
}
0x15dd   : > { %s3033_s8 = scalar_lea.hbm %s2223_s18, 128  ;;  %s3037_s6 = scalar_lea.hbm %s3769_s23, 256 }
0x15de   : > { %p3034_p4 = scmp.ne.s32.totalorder %s2223_s18, %s3033_s8  ;;  %p3038_p8 = scmp.lt.s32.totalorder %s2223_s18, %s3769_s23 }
0x15df   : > { %p3039_p10 = scmp.lt.s32.totalorder %s3037_s6, %s3033_s8 }
0x15e0   : > { %p3035_p1 = pnand %p3034_p4, %p3770_p0 }
0x15e1   : > { %p3040_p12 = por %p3039_p10, %p3038_p8 }
0x15e2   : > { %p3036_p5 = pneg %p3035_p1 }
0x15e4   : > { %p3041_p13 = pnand %p3040_p12, %p3036_p5 }
0x15e6   : > { %3044 = shalt.err (!%p3041_p13)
}
0x15e7   : > { %2703 = dma.vmem_to_hbm [thread:$0]  (%p3770_p0), %s2226_s5, 128, %s2223_s18, %s2212_s25  }
0x15e8 PF: > { %s2237_s9 = sand.u32 1, %s3083_s27   ;;  %p3771_p2 = scmp.ne.s32.totalorder %s3753_s26, 0 }
0x15e9   : > { %p3772_p7 = scmp.ge.s32.totalorder %s3095_s30, 2  ;;  %s2238_s0 = scalar_lea.sflag [#allocation4], %s2237_s9 }
0x15eb   : > { %p2729_p9 = pnand %p3772_p7, %p3771_p2 }
0x15ed   : > { %p2730_p11 = pneg %p2729_p9 }
0x15ef   : > { %3078 = dma.done.wait (%p2730_p11), %s2238_s0, 128  }
0x15f0   : > { %3080 = vsyncadd (%p2730_p11), %s2238_s0, 4294967168  ;;  %p34_p3 = scmp.ge.s32.totalorder %s3303_s2, 4   ;;  %s3773_s27 = smov %s3087_s28 }
0x15f1   : > { %s3774_s28 = smov %s3091_s29  ;;  %s3775_s29 = smov %s3314_s21 }
0x15f2   : > { %s3776_s30 = smov %s3303_s2  ;;  %36 = sbr.rel (!%p34_p3) target bundleno = 22 (0x16), region = 170 }
0x15f7   :  { %2243 = vsyncpa [#allocation3], 1 }
0x15f8   :  { %2245 = vsyncpa [#allocation3 + $0x1], 1 }
0x15f9   :  { %2246 = vsyncpa [#allocation6], 1 }
0x15fa   :  { %2247 = vsyncpa [#allocation9], 1 }
0x15fb   :  { %2248 = vsyncpa [#allocation12], 1 }
0x15fc   :  { %2249 = vsyncpa [#allocation4], 1 }
0x15fd   :  { %2251 = vsyncpa [#allocation4 + $0x1], 1 }

</bundles_post_ra>
